<compile_context>
chip_gen: v7x
topology: tpu7x:2x2x1
jax: 0.10.0
libtpu: 0.0.40
codegen_flags: <defaults>
</compile_context>

<pallas_src>
import functools

import jax
import jax.numpy as jnp
from jax import lax
from jax.experimental import pallas as pl
from jax.experimental.pallas import tpu as pltpu

EPS = 1e-5  # torch.nn.LayerNorm default


def _gelu_tanh(x):
    # TODO(synk): MlpBlock is not defined in the source file; we assume the
    # standard ViT MLP (Linear -> GELU(tanh approx) -> Linear), dropout = id.
    c = 0.7978845608028654  # sqrt(2/pi)
    return 0.5 * x * (1.0 + jnp.tanh(c * (x + 0.044715 * x * x * x)))


def _layernorm(x, g, b):
    mu = jnp.mean(x, axis=-1, keepdims=True)
    var = jnp.mean((x - mu) ** 2, axis=-1, keepdims=True)
    return (x - mu) * lax.rsqrt(var + EPS) * g + b


# --------------------------------------------------------------------------- #
# Kernel: whole FusionLayer (all blocks + final LayerNorm) in one pallas_call
# --------------------------------------------------------------------------- #
def fusion_layer_kernel(q_ref, ctx_ref,
                        ln1g_ref, ln1b_ref, wq_ref, wkv_ref, wo_ref, bo_ref,
                        ln2g_ref, ln2b_ref, w1_ref, b1_ref, w2_ref, b2_ref,
                        lnfg_ref, lnfb_ref,
                        o_ref, carry_ref,
                        *, heads, dim_head):
    blk = pl.program_id(0)
    nblk = pl.num_programs(0)
    B, E = carry_ref.shape
    d = dim_head
    inner = heads * d
    scale = d ** -0.5
    bf16 = jnp.bfloat16

    # Load the initial query into the resident activation carry at block 0.
    @pl.when(blk == 0)
    def _():
        carry_ref[...] = q_ref[...]

    x = carry_ref[...]          # (B, E)  residual stream, f32
    ctx = ctx_ref[...]          # (B, 2E) context for this block, f32

    # ---------------- attention branch (cross batch*heads attention) --------
    h1 = _layernorm(x, ln1g_ref[...], ln1b_ref[...])
    q = jnp.dot(h1.astype(bf16), wq_ref[...],
                preferred_element_type=jnp.float32)           # (B, inner)
    kv = jnp.dot(ctx.astype(bf16), wkv_ref[...],
                 preferred_element_type=jnp.float32)          # (B, 2*inner)

    # Permute Q/K/V to (head, batch)-major rows.  The original flattens
    # 'b (h d) -> (b h) d' and attends over the full (B*h, B*h) matrix;
    # softmax and attn@V are invariant to this key-row permutation, and the
    # query-row permutation is undone below in the per-head wo projection.
    qp = jnp.concatenate([q[:, h * d:(h + 1) * d] for h in range(heads)], axis=0)
    kp = jnp.concatenate([kv[:, h * d:(h + 1) * d] for h in range(heads)], axis=0)
    vp = jnp.concatenate([kv[:, inner + h * d:inner + (h + 1) * d]
                          for h in range(heads)], axis=0)      # (h*B, d)

    sim = lax.dot_general(qp.astype(bf16), kp.astype(bf16),
                          (((1,), (1,)), ((), ())),
                          preferred_element_type=jnp.float32) * scale  # (hB, hB)
    sim = sim - jnp.max(sim, axis=-1, keepdims=True)
    p = jnp.exp(sim)
    p = p * pl.reciprocal(jnp.sum(p, axis=-1, keepdims=True), approx=True)
    op = jnp.dot(p.astype(bf16), vp.astype(bf16),
                 preferred_element_type=jnp.float32)           # (hB, d)

    # attn_out[b,:] = concat_h op[(h,b),:] @ wo  ==  sum_h op_h @ wo_rows_h
    wo = wo_ref[...]
    attn = jnp.zeros((B, E), jnp.float32)
    for h in range(heads):
        attn = attn + jnp.dot(op[h * B:(h + 1) * B, :].astype(bf16),
                              wo[h * d:(h + 1) * d, :],
                              preferred_element_type=jnp.float32)
    out1 = attn + bo_ref[...] + x

    # ---------------- MLP branch --------------------------------------------
    h2 = _layernorm(out1, ln2g_ref[...], ln2b_ref[...])
    m = jnp.dot(h2.astype(bf16), w1_ref[...],
                preferred_element_type=jnp.float32) + b1_ref[...]
    m = _gelu_tanh(m)
    m = jnp.dot(m.astype(bf16), w2_ref[...],
                preferred_element_type=jnp.float32) + b2_ref[...]
    out = m + out1

    carry_ref[...] = out

    # Final LayerNorm of FusionLayer, fused into the last grid step.
    @pl.when(blk == nblk - 1)
    def _():
        o_ref[...] = _layernorm(out, lnfg_ref[...], lnfb_ref[...])


# --------------------------------------------------------------------------- #
# Wrapper
# --------------------------------------------------------------------------- #
def fusion_layer_forward(query, context_list, packed, heads, dim_head):
    B, E = query.shape
    nb = len(context_list)
    inner = heads * dim_head
    mlp_dim = packed["w1"].shape[-1]
    ctx_all = jnp.stack(context_list, axis=0)                  # (nb, B, 2E)

    def per_block(s1, s2):
        # stacked (nb, s1, s2) array; grid step b sees the (s1, s2) slab.
        return pl.BlockSpec((None, s1, s2), lambda b: (b, 0, 0))

    def whole(s1, s2):
        return pl.BlockSpec((s1, s2), lambda b: (0, 0))

    in_specs = [
        whole(B, E),                    # query (used only at block 0)
        per_block(B, 2 * E),            # context for block b
        per_block(1, E), per_block(1, E),            # ln1 gamma / beta
        per_block(E, inner),                         # wq   (bf16)
        per_block(2 * E, 2 * inner),                 # wkv  (bf16)
        per_block(inner, E),                         # wo   (bf16)
        per_block(1, E),                             # bo
        per_block(1, E), per_block(1, E),            # ln2 gamma / beta
        per_block(E, mlp_dim), per_block(1, mlp_dim),  # w1 (bf16), b1
        per_block(mlp_dim, E), per_block(1, E),        # w2 (bf16), b2
        whole(1, E), whole(1, E),                    # final LN gamma / beta
    ]

    grid_spec = pltpu.PrefetchScalarGridSpec(
        num_scalar_prefetch=0,
        grid=(nb,),
        in_specs=in_specs,
        out_specs=whole(B, E),
        scratch_shapes=[pltpu.VMEM((B, E), jnp.float32)],      # activation carry
    )
    kern = functools.partial(fusion_layer_kernel, heads=heads, dim_head=dim_head)
    return pl.pallas_call(
        kern,
        out_shape=jax.ShapeDtypeStruct((B, E), jnp.float32),
        grid_spec=grid_spec,
        compiler_params=pltpu.CompilerParams(
            dimension_semantics=("arbitrary",),     # sequential carry over blocks
            vmem_limit_bytes=32 * 1024 * 1024,
        ),
    )(query, ctx_all,
      packed["ln1_g"], packed["ln1_b"], packed["wq"], packed["wkv"],
      packed["wo"], packed["bo"], packed["ln2_g"], packed["ln2_b"],
      packed["w1"], packed["b1"], packed["w2"], packed["b2"],
      packed["lnf_g"], packed["lnf_b"])


# --------------------------------------------------------------------------- #
# Deterministic parameter init (PyTorch shapes, pre-transposed to (in, out))
# --------------------------------------------------------------------------- #
def init_params(key, emb_dim, mlp_dim, heads, dim_head, num_blocks):
    inner = heads * dim_head
    ctx_dim = 2 * emb_dim
    blocks = []
    for i in range(num_blocks):
        ks = jax.random.split(jax.random.fold_in(key, i), 8)
        blocks.append({
            "ln1_g": jnp.ones((1, emb_dim), jnp.float32),
            "ln1_b": jnp.zeros((1, emb_dim), jnp.float32),
            "wq": 0.02 * jax.random.normal(ks[0], (emb_dim, inner), jnp.float32),
            "wkv": 0.02 * jax.random.normal(ks[1], (ctx_dim, 2 * inner), jnp.float32),
            "wo": 0.02 * jax.random.normal(ks[2], (inner, emb_dim), jnp.float32),
            "bo": 0.02 * jax.random.normal(ks[3], (1, emb_dim), jnp.float32),
            "ln2_g": jnp.ones((1, emb_dim), jnp.float32),
            "ln2_b": jnp.zeros((1, emb_dim), jnp.float32),
            "w1": 0.02 * jax.random.normal(ks[4], (emb_dim, mlp_dim), jnp.float32),
            "b1": 0.02 * jax.random.normal(ks[5], (1, mlp_dim), jnp.float32),
            "w2": 0.02 * jax.random.normal(ks[6], (mlp_dim, emb_dim), jnp.float32),
            "b2": 0.02 * jax.random.normal(ks[7], (1, emb_dim), jnp.float32),
        })
    return {"blocks": blocks,
            "lnf_g": jnp.ones((1, emb_dim), jnp.float32),
            "lnf_b": jnp.zeros((1, emb_dim), jnp.float32)}


def pack_params(params):
    """Stack per-block params along a leading axis; matmul weights as bf16."""
    blocks = params["blocks"]

    def stk(name, dtype=jnp.float32):
        return jnp.stack([b[name] for b in blocks], axis=0).astype(dtype)

    return {
        "ln1_g": stk("ln1_g"), "ln1_b": stk("ln1_b"),
        "wq": stk("wq", jnp.bfloat16), "wkv": stk("wkv", jnp.bfloat16),
        "wo": stk("wo", jnp.bfloat16), "bo": stk("bo"),
        "ln2_g": stk("ln2_g"), "ln2_b": stk("ln2_b"),
        "w1": stk("w1", jnp.bfloat16), "b1": stk("b1"),
        "w2": stk("w2", jnp.bfloat16), "b2": stk("b2"),
        "lnf_g": params["lnf_g"], "lnf_b": params["lnf_b"],
    }


# --------------------------------------------------------------------------- #
# Pure-JAX f32 reference (mirrors the PyTorch forward, eval mode)
# --------------------------------------------------------------------------- #
def reference_forward(query, context_list, params, heads, dim_head):
    inner = heads * dim_head
    scale = dim_head ** -0.5
    out = query
    for p, ctx in zip(params["blocks"], context_list):
        resid = out
        h1 = _layernorm(out, p["ln1_g"], p["ln1_b"])
        q = h1 @ p["wq"]
        kv = ctx @ p["wkv"]
        k, v = kv[:, :inner], kv[:, inner:]
        B = q.shape[0]
        qh = q.reshape(B * heads, dim_head)
        kh = k.reshape(B * heads, dim_head)
        vh = v.reshape(B * heads, dim_head)
        sim = (qh @ kh.T) * scale
        attn = jax.nn.softmax(sim, axis=-1)
        o = (attn @ vh).reshape(B, inner)
        o = o @ p["wo"] + p["bo"]
        out1 = o + resid
        h2 = _layernorm(out1, p["ln2_g"], p["ln2_b"])
        m = _gelu_tanh(h2 @ p["w1"] + p["b1"])
        m = m @ p["w2"] + p["b2"]
        out = m + out1
    return _layernorm(out, params["lnf_g"], params["lnf_b"])


if __name__ == "__main__":
    B = 8
    emb_dim = 128
    mlp_dim = 256
    heads = 4
    dim_head = 64            # Attention default
    num_sim_block = 2        # exercise the multi-block grid + carry

    key = jax.random.PRNGKey(0)
    kq, kc, kparams = jax.random.split(key, 3)
    query = jax.random.normal(kq, (B, emb_dim), jnp.float32)
    context_list = [
        jax.random.normal(jax.random.fold_in(kc, i), (B, 2 * emb_dim), jnp.float32)
        for i in range(num_sim_block)
    ]
    params = init_params(kparams, emb_dim, mlp_dim, heads, dim_head, num_sim_block)
    packed = pack_params(params)

    out = fusion_layer_forward(query, context_list, packed, heads, dim_head)
    out = jax.block_until_ready(out)

    ref = reference_forward(query, context_list, params, heads, dim_head)
    err = float(jnp.max(jnp.abs(out - ref)))
    # bf16 matmul operands (f32 accumulation) + approx reciprocal vs f32 ref.
    if not jnp.allclose(out, ref, atol=2e-2, rtol=2e-2):
        raise AssertionError(f"mismatch vs reference: max abs err = {err:e}")
    print("KERNEL_OK")
</pallas_src>

<mosaic_0001>
module attributes {stable_mosaic.version = 11 : i64} {
  func.func @fusion_layer_kernel(%arg0: i32, %arg1: memref<8x128xf32, #tpu.memory_space<vmem>>, %arg2: memref<1x8x256xf32, #tpu.memory_space<vmem>>, %arg3: memref<1x1x128xf32, #tpu.memory_space<vmem>>, %arg4: memref<1x1x128xf32, #tpu.memory_space<vmem>>, %arg5: memref<1x128x256xbf16, #tpu.memory_space<vmem>>, %arg6: memref<1x256x512xbf16, #tpu.memory_space<vmem>>, %arg7: memref<1x256x128xbf16, #tpu.memory_space<vmem>>, %arg8: memref<1x1x128xf32, #tpu.memory_space<vmem>>, %arg9: memref<1x1x128xf32, #tpu.memory_space<vmem>>, %arg10: memref<1x1x128xf32, #tpu.memory_space<vmem>>, %arg11: memref<1x128x256xbf16, #tpu.memory_space<vmem>>, %arg12: memref<1x1x256xf32, #tpu.memory_space<vmem>>, %arg13: memref<1x256x128xbf16, #tpu.memory_space<vmem>>, %arg14: memref<1x1x128xf32, #tpu.memory_space<vmem>>, %arg15: memref<1x128xf32, #tpu.memory_space<vmem>>, %arg16: memref<1x128xf32, #tpu.memory_space<vmem>>, %arg17: memref<8x128xf32, #tpu.memory_space<vmem>>, %arg18: memref<8x128xf32, #tpu.memory_space<vmem>>) attributes {dimension_semantics = [#tpu.dimension_semantics<arbitrary>], iteration_bounds = array<i64: 2>, scalar_prefetch = 0 : i64, scratch_operands = 1 : i64, tpu.core_type = #tpu.core_type<tc>, window_params = [{pipeline_mode = #tpu.pipeline_mode<synchronous>, transform_indices = @transform_0, window_bounds = array<i64: 8, 128>}, {transform_indices = @transform_1, window_bounds = array<i64: 1, 8, 256>}, {transform_indices = @transform_2, window_bounds = array<i64: 1, 1, 128>}, {transform_indices = @transform_3, window_bounds = array<i64: 1, 1, 128>}, {transform_indices = @transform_4, window_bounds = array<i64: 1, 128, 256>}, {transform_indices = @transform_5, window_bounds = array<i64: 1, 256, 512>}, {transform_indices = @transform_6, window_bounds = array<i64: 1, 256, 128>}, {transform_indices = @transform_7, window_bounds = array<i64: 1, 1, 128>}, {transform_indices = @transform_8, window_bounds = array<i64: 1, 1, 128>}, {transform_indices = @transform_9, window_bounds = array<i64: 1, 1, 128>}, {transform_indices = @transform_10, window_bounds = array<i64: 1, 128, 256>}, {transform_indices = @transform_11, window_bounds = array<i64: 1, 1, 256>}, {transform_indices = @transform_12, window_bounds = array<i64: 1, 256, 128>}, {transform_indices = @transform_13, window_bounds = array<i64: 1, 1, 128>}, {pipeline_mode = #tpu.pipeline_mode<synchronous>, transform_indices = @transform_14, window_bounds = array<i64: 1, 128>}, {pipeline_mode = #tpu.pipeline_mode<synchronous>, transform_indices = @transform_15, window_bounds = array<i64: 1, 128>}, {pipeline_mode = #tpu.pipeline_mode<synchronous>, transform_indices = @transform_16, window_bounds = array<i64: 8, 128>}]} {
    %c0_i32 = arith.constant 0 : i32
    %0 = arith.cmpi eq, %arg0, %c0_i32 : i32
    %1 = arith.extui %0 : i1 to i32
    %c0_i32_0 = arith.constant 0 : i32
    %2 = arith.cmpi ne, %1, %c0_i32_0 : i32
    scf.if %2 {
      %c0_71 = arith.constant 0 : index
      %c0_72 = arith.constant 0 : index
      %161 = vector.load %arg1[%c0_71, %c0_72] : memref<8x128xf32, #tpu.memory_space<vmem>>, vector<8x128xf32>
      %c0_73 = arith.constant 0 : index
      %c0_74 = arith.constant 0 : index
      %162 = vector.load %arg18[%c0_73, %c0_74] : memref<8x128xf32, #tpu.memory_space<vmem>>, vector<8x128xf32>
      tpu.vector_store %arg18[%c0_73, %c0_74], %161 {strides = array<i32>} : memref<8x128xf32, #tpu.memory_space<vmem>>, vector<8x128xf32>,
    } else {
    }
    %c0 = arith.constant 0 : index
    %c0_1 = arith.constant 0 : index
    %3 = vector.load %arg18[%c0, %c0_1] : memref<8x128xf32, #tpu.memory_space<vmem>>, vector<8x128xf32>
    %c0_2 = arith.constant 0 : index
    %c0_3 = arith.constant 0 : index
    %c0_4 = arith.constant 0 : index
    %4 = vector.load %arg2[%c0_2, %c0_3, %c0_4] : memref<1x8x256xf32, #tpu.memory_space<vmem>>, vector<1x8x256xf32>
    %5 = vector.shape_cast %4 : vector<1x8x256xf32> to vector<8x256xf32>
    %c0_5 = arith.constant 0 : index
    %c0_6 = arith.constant 0 : index
    %c0_7 = arith.constant 0 : index
    %6 = vector.load %arg3[%c0_5, %c0_6, %c0_7] : memref<1x1x128xf32, #tpu.memory_space<vmem>>, vector<1x1x128xf32>
    %7 = vector.shape_cast %6 : vector<1x1x128xf32> to vector<1x128xf32>
    %c0_8 = arith.constant 0 : index
    %c0_9 = arith.constant 0 : index
    %c0_10 = arith.constant 0 : index
    %8 = vector.load %arg4[%c0_8, %c0_9, %c0_10] : memref<1x1x128xf32, #tpu.memory_space<vmem>>, vector<1x1x128xf32>
    %9 = vector.shape_cast %8 : vector<1x1x128xf32> to vector<1x128xf32>
    %cst = arith.constant dense<0.000000e+00> : vector<8xf32>
    %10 = vector.multi_reduction <add>, %3, %cst [1] : vector<8x128xf32> to vector<8xf32>
    %11 = vector.shape_cast %10 : vector<8xf32> to vector<8x1xf32>
    %cst_11 = arith.constant 1.280000e+02 : f32
    %12 = vector.broadcast %cst_11 : f32 to vector<8x1xf32>
    %13 = arith.divf %11, %12 : vector<8x1xf32>
    %14 = vector.broadcast %13 : vector<8x1xf32> to vector<8x128xf32>
    %15 = arith.subf %3, %14 : vector<8x128xf32>
    %16 = arith.mulf %15, %15 : vector<8x128xf32>
    %cst_12 = arith.constant dense<0.000000e+00> : vector<8xf32>
    %17 = vector.multi_reduction <add>, %16, %cst_12 [1] : vector<8x128xf32> to vector<8xf32>
    %18 = vector.shape_cast %17 : vector<8xf32> to vector<8x1xf32>
    %cst_13 = arith.constant 1.280000e+02 : f32
    %19 = vector.broadcast %cst_13 : f32 to vector<8x1xf32>
    %20 = arith.divf %18, %19 : vector<8x1xf32>
    %21 = vector.broadcast %13 : vector<8x1xf32> to vector<8x128xf32>
    %22 = arith.subf %3, %21 : vector<8x128xf32>
    %cst_14 = arith.constant 9.99999974E-6 : f32
    %23 = vector.broadcast %cst_14 : f32 to vector<8x1xf32>
    %24 = arith.addf %20, %23 : vector<8x1xf32>
    %25 = math.rsqrt %24 : vector<8x1xf32>
    %26 = vector.broadcast %25 : vector<8x1xf32> to vector<8x128xf32>
    %27 = arith.mulf %22, %26 : vector<8x128xf32>
    %28 = vector.broadcast %7 : vector<1x128xf32> to vector<8x128xf32>
    %29 = arith.mulf %27, %28 : vector<8x128xf32>
    %30 = vector.broadcast %9 : vector<1x128xf32> to vector<8x128xf32>
    %31 = arith.addf %29, %30 : vector<8x128xf32>
    %32 = arith.truncf %31 : vector<8x128xf32> to vector<8x128xbf16>
    %c0_15 = arith.constant 0 : index
    %c0_16 = arith.constant 0 : index
    %c0_17 = arith.constant 0 : index
    %33 = vector.load %arg5[%c0_15, %c0_16, %c0_17] : memref<1x128x256xbf16, #tpu.memory_space<vmem>>, vector<1x128x256xbf16>
    %34 = vector.shape_cast %33 : vector<1x128x256xbf16> to vector<128x256xbf16>
    %cst_18 = arith.constant dense<0.000000e+00> : vector<8x256xf32>
    %35 = tpu.matmul %32, %34, %cst_18 {dimension_numbers = #tpu.dot_dimension_numbers<[1], [0], [0], [1], [0, 0, 1, 1], [], []>} : vector<8x128xbf16>, vector<128x256xbf16>, vector<8x256xf32> -> vector<8x256xf32>
    %36 = arith.truncf %5 : vector<8x256xf32> to vector<8x256xbf16>
    %c0_19 = arith.constant 0 : index
    %c0_20 = arith.constant 0 : index
    %c0_21 = arith.constant 0 : index
    %37 = vector.load %arg6[%c0_19, %c0_20, %c0_21] : memref<1x256x512xbf16, #tpu.memory_space<vmem>>, vector<1x256x512xbf16>
    %38 = vector.shape_cast %37 : vector<1x256x512xbf16> to vector<256x512xbf16>
    %cst_22 = arith.constant dense<0.000000e+00> : vector<8x512xf32>
    %39 = tpu.matmul %36, %38, %cst_22 {dimension_numbers = #tpu.dot_dimension_numbers<[1], [0], [0], [1], [0, 0, 1, 1], [], []>} : vector<8x256xbf16>, vector<256x512xbf16>, vector<8x512xf32> -> vector<8x512xf32>
    %40 = vector.extract_strided_slice %35 {offsets = [0, 0], sizes = [8, 64], strides = [1, 1]} : vector<8x256xf32> to vector<8x64xf32>
    %41 = vector.extract_strided_slice %35 {offsets = [0, 64], sizes = [8, 64], strides = [1, 1]} : vector<8x256xf32> to vector<8x64xf32>
    %42 = vector.extract_strided_slice %35 {offsets = [0, 128], sizes = [8, 64], strides = [1, 1]} : vector<8x256xf32> to vector<8x64xf32>
    %43 = vector.extract_strided_slice %35 {offsets = [0, 192], sizes = [8, 64], strides = [1, 1]} : vector<8x256xf32> to vector<8x64xf32>
    %44 = tpu.concatenate %40, %41, %42, %43 in 0 : vector<8x64xf32>, vector<8x64xf32>, vector<8x64xf32>, vector<8x64xf32> -> vector<32x64xf32>
    %45 = vector.extract_strided_slice %39 {offsets = [0, 0], sizes = [8, 64], strides = [1, 1]} : vector<8x512xf32> to vector<8x64xf32>
    %46 = vector.extract_strided_slice %39 {offsets = [0, 64], sizes = [8, 64], strides = [1, 1]} : vector<8x512xf32> to vector<8x64xf32>
    %47 = vector.extract_strided_slice %39 {offsets = [0, 128], sizes = [8, 64], strides = [1, 1]} : vector<8x512xf32> to vector<8x64xf32>
    %48 = vector.extract_strided_slice %39 {offsets = [0, 192], sizes = [8, 64], strides = [1, 1]} : vector<8x512xf32> to vector<8x64xf32>
    %49 = tpu.concatenate %45, %46, %47, %48 in 0 : vector<8x64xf32>, vector<8x64xf32>, vector<8x64xf32>, vector<8x64xf32> -> vector<32x64xf32>
    %50 = vector.extract_strided_slice %39 {offsets = [0, 256], sizes = [8, 64], strides = [1, 1]} : vector<8x512xf32> to vector<8x64xf32>
    %51 = vector.extract_strided_slice %39 {offsets = [0, 320], sizes = [8, 64], strides = [1, 1]} : vector<8x512xf32> to vector<8x64xf32>
    %52 = vector.extract_strided_slice %39 {offsets = [0, 384], sizes = [8, 64], strides = [1, 1]} : vector<8x512xf32> to vector<8x64xf32>
    %53 = vector.extract_strided_slice %39 {offsets = [0, 448], sizes = [8, 64], strides = [1, 1]} : vector<8x512xf32> to vector<8x64xf32>
    %54 = tpu.concatenate %50, %51, %52, %53 in 0 : vector<8x64xf32>, vector<8x64xf32>, vector<8x64xf32>, vector<8x64xf32> -> vector<32x64xf32>
    %55 = arith.truncf %44 : vector<32x64xf32> to vector<32x64xbf16>
    %56 = arith.truncf %49 : vector<32x64xf32> to vector<32x64xbf16>
    %cst_23 = arith.constant dense<0.000000e+00> : vector<32x32xf32>
    %57 = tpu.matmul %55, %56, %cst_23 {dimension_numbers = #tpu.dot_dimension_numbers<[1], [1], [0], [0], [0, 0, 1, 0], [], []>} : vector<32x64xbf16>, vector<32x64xbf16>, vector<32x32xf32> -> vector<32x32xf32>
    %cst_24 = arith.constant 1.250000e-01 : f32
    %58 = vector.broadcast %cst_24 : f32 to vector<32x32xf32>
    %59 = arith.mulf %57, %58 : vector<32x32xf32>
    %cst_25 = arith.constant dense<0xFF800000> : vector<32xf32>
    %60 = vector.multi_reduction <maximumf>, %59, %cst_25 [1] : vector<32x32xf32> to vector<32xf32>
    %61 = vector.shape_cast %60 : vector<32xf32> to vector<32x1xf32>
    %62 = vector.broadcast %61 : vector<32x1xf32> to vector<32x32xf32>
    %63 = arith.subf %59, %62 : vector<32x32xf32>
    %64 = math.exp %63 : vector<32x32xf32>
    %cst_26 = arith.constant dense<0.000000e+00> : vector<32xf32>
    %65 = vector.multi_reduction <add>, %64, %cst_26 [1] : vector<32x32xf32> to vector<32xf32>
    %66 = vector.shape_cast %65 : vector<32xf32> to vector<32x1xf32>
    %67 = tpu.reciprocal %66 {approx = true} : vector<32x1xf32> -> vector<32x1xf32>
    %68 = vector.broadcast %67 : vector<32x1xf32> to vector<32x32xf32>
    %69 = arith.mulf %64, %68 : vector<32x32xf32>
    %70 = arith.truncf %69 : vector<32x32xf32> to vector<32x32xbf16>
    %71 = arith.truncf %54 : vector<32x64xf32> to vector<32x64xbf16>
    %cst_27 = arith.constant dense<0.000000e+00> : vector<32x64xf32>
    %72 = tpu.matmul %70, %71, %cst_27 {dimension_numbers = #tpu.dot_dimension_numbers<[1], [0], [0], [1], [0, 0, 1, 1], [], []>} : vector<32x32xbf16>, vector<32x64xbf16>, vector<32x64xf32> -> vector<32x64xf32>
    %c0_28 = arith.constant 0 : index
    %c0_29 = arith.constant 0 : index
    %c0_30 = arith.constant 0 : index
    %73 = vector.load %arg7[%c0_28, %c0_29, %c0_30] : memref<1x256x128xbf16, #tpu.memory_space<vmem>>, vector<1x256x128xbf16>
    %74 = vector.shape_cast %73 : vector<1x256x128xbf16> to vector<256x128xbf16>
    %cst_31 = arith.constant 0.000000e+00 : f32
    %75 = vector.broadcast %cst_31 : f32 to vector<8x128xf32>
    %76 = vector.extract_strided_slice %72 {offsets = [0, 0], sizes = [8, 64], strides = [1, 1]} : vector<32x64xf32> to vector<8x64xf32>
    %77 = arith.truncf %76 : vector<8x64xf32> to vector<8x64xbf16>
    %78 = vector.extract_strided_slice %74 {offsets = [0, 0], sizes = [64, 128], strides = [1, 1]} : vector<256x128xbf16> to vector<64x128xbf16>
    %cst_32 = arith.constant dense<0.000000e+00> : vector<8x128xf32>
    %79 = tpu.matmul %77, %78, %cst_32 {dimension_numbers = #tpu.dot_dimension_numbers<[1], [0], [0], [1], [0, 0, 1, 1], [], []>} : vector<8x64xbf16>, vector<64x128xbf16>, vector<8x128xf32> -> vector<8x128xf32>
    %80 = arith.addf %75, %79 : vector<8x128xf32>
    %81 = vector.extract_strided_slice %72 {offsets = [8, 0], sizes = [8, 64], strides = [1, 1]} : vector<32x64xf32> to vector<8x64xf32>
    %82 = arith.truncf %81 : vector<8x64xf32> to vector<8x64xbf16>
    %83 = vector.extract_strided_slice %74 {offsets = [64, 0], sizes = [64, 128], strides = [1, 1]} : vector<256x128xbf16> to vector<64x128xbf16>
    %cst_33 = arith.constant dense<0.000000e+00> : vector<8x128xf32>
    %84 = tpu.matmul %82, %83, %cst_33 {dimension_numbers = #tpu.dot_dimension_numbers<[1], [0], [0], [1], [0, 0, 1, 1], [], []>} : vector<8x64xbf16>, vector<64x128xbf16>, vector<8x128xf32> -> vector<8x128xf32>
    %85 = arith.addf %80, %84 : vector<8x128xf32>
    %86 = vector.extract_strided_slice %72 {offsets = [16, 0], sizes = [8, 64], strides = [1, 1]} : vector<32x64xf32> to vector<8x64xf32>
    %87 = arith.truncf %86 : vector<8x64xf32> to vector<8x64xbf16>
    %88 = vector.extract_strided_slice %74 {offsets = [128, 0], sizes = [64, 128], strides = [1, 1]} : vector<256x128xbf16> to vector<64x128xbf16>
    %cst_34 = arith.constant dense<0.000000e+00> : vector<8x128xf32>
    %89 = tpu.matmul %87, %88, %cst_34 {dimension_numbers = #tpu.dot_dimension_numbers<[1], [0], [0], [1], [0, 0, 1, 1], [], []>} : vector<8x64xbf16>, vector<64x128xbf16>, vector<8x128xf32> -> vector<8x128xf32>
    %90 = arith.addf %85, %89 : vector<8x128xf32>
    %91 = vector.extract_strided_slice %72 {offsets = [24, 0], sizes = [8, 64], strides = [1, 1]} : vector<32x64xf32> to vector<8x64xf32>
    %92 = arith.truncf %91 : vector<8x64xf32> to vector<8x64xbf16>
    %93 = vector.extract_strided_slice %74 {offsets = [192, 0], sizes = [64, 128], strides = [1, 1]} : vector<256x128xbf16> to vector<64x128xbf16>
    %cst_35 = arith.constant dense<0.000000e+00> : vector<8x128xf32>
    %94 = tpu.matmul %92, %93, %cst_35 {dimension_numbers = #tpu.dot_dimension_numbers<[1], [0], [0], [1], [0, 0, 1, 1], [], []>} : vector<8x64xbf16>, vector<64x128xbf16>, vector<8x128xf32> -> vector<8x128xf32>
    %95 = arith.addf %90, %94 : vector<8x128xf32>
    %c0_36 = arith.constant 0 : index
    %c0_37 = arith.constant 0 : index
    %c0_38 = arith.constant 0 : index
    %96 = vector.load %arg8[%c0_36, %c0_37, %c0_38] : memref<1x1x128xf32, #tpu.memory_space<vmem>>, vector<1x1x128xf32>
    %97 = vector.shape_cast %96 : vector<1x1x128xf32> to vector<1x128xf32>
    %98 = vector.broadcast %97 : vector<1x128xf32> to vector<8x128xf32>
    %99 = arith.addf %95, %98 : vector<8x128xf32>
    %100 = arith.addf %99, %3 : vector<8x128xf32>
    %c0_39 = arith.constant 0 : index
    %c0_40 = arith.constant 0 : index
    %c0_41 = arith.constant 0 : index
    %101 = vector.load %arg9[%c0_39, %c0_40, %c0_41] : memref<1x1x128xf32, #tpu.memory_space<vmem>>, vector<1x1x128xf32>
    %102 = vector.shape_cast %101 : vector<1x1x128xf32> to vector<1x128xf32>
    %c0_42 = arith.constant 0 : index
    %c0_43 = arith.constant 0 : index
    %c0_44 = arith.constant 0 : index
    %103 = vector.load %arg10[%c0_42, %c0_43, %c0_44] : memref<1x1x128xf32, #tpu.memory_space<vmem>>, vector<1x1x128xf32>
    %104 = vector.shape_cast %103 : vector<1x1x128xf32> to vector<1x128xf32>
    %cst_45 = arith.constant dense<0.000000e+00> : vector<8xf32>
    %105 = vector.multi_reduction <add>, %100, %cst_45 [1] : vector<8x128xf32> to vector<8xf32>
    %106 = vector.shape_cast %105 : vector<8xf32> to vector<8x1xf32>
    %cst_46 = arith.constant 1.280000e+02 : f32
    %107 = vector.broadcast %cst_46 : f32 to vector<8x1xf32>
    %108 = arith.divf %106, %107 : vector<8x1xf32>
    %109 = vector.broadcast %108 : vector<8x1xf32> to vector<8x128xf32>
    %110 = arith.subf %100, %109 : vector<8x128xf32>
    %111 = arith.mulf %110, %110 : vector<8x128xf32>
    %cst_47 = arith.constant dense<0.000000e+00> : vector<8xf32>
    %112 = vector.multi_reduction <add>, %111, %cst_47 [1] : vector<8x128xf32> to vector<8xf32>
    %113 = vector.shape_cast %112 : vector<8xf32> to vector<8x1xf32>
    %cst_48 = arith.constant 1.280000e+02 : f32
    %114 = vector.broadcast %cst_48 : f32 to vector<8x1xf32>
    %115 = arith.divf %113, %114 : vector<8x1xf32>
    %116 = vector.broadcast %108 : vector<8x1xf32> to vector<8x128xf32>
    %117 = arith.subf %100, %116 : vector<8x128xf32>
    %cst_49 = arith.constant 9.99999974E-6 : f32
    %118 = vector.broadcast %cst_49 : f32 to vector<8x1xf32>
    %119 = arith.addf %115, %118 : vector<8x1xf32>
    %120 = math.rsqrt %119 : vector<8x1xf32>
    %121 = vector.broadcast %120 : vector<8x1xf32> to vector<8x128xf32>
    %122 = arith.mulf %117, %121 : vector<8x128xf32>
    %123 = vector.broadcast %102 : vector<1x128xf32> to vector<8x128xf32>
    %124 = arith.mulf %122, %123 : vector<8x128xf32>
    %125 = vector.broadcast %104 : vector<1x128xf32> to vector<8x128xf32>
    %126 = arith.addf %124, %125 : vector<8x128xf32>
    %127 = arith.truncf %126 : vector<8x128xf32> to vector<8x128xbf16>
    %c0_50 = arith.constant 0 : index
    %c0_51 = arith.constant 0 : index
    %c0_52 = arith.constant 0 : index
    %128 = vector.load %arg11[%c0_50, %c0_51, %c0_52] : memref<1x128x256xbf16, #tpu.memory_space<vmem>>, vector<1x128x256xbf16>
    %129 = vector.shape_cast %128 : vector<1x128x256xbf16> to vector<128x256xbf16>
    %cst_53 = arith.constant dense<0.000000e+00> : vector<8x256xf32>
    %130 = tpu.matmul %127, %129, %cst_53 {dimension_numbers = #tpu.dot_dimension_numbers<[1], [0], [0], [1], [0, 0, 1, 1], [], []>} : vector<8x128xbf16>, vector<128x256xbf16>, vector<8x256xf32> -> vector<8x256xf32>
    %c0_54 = arith.constant 0 : index
    %c0_55 = arith.constant 0 : index
    %c0_56 = arith.constant 0 : index
    %131 = vector.load %arg12[%c0_54, %c0_55, %c0_56] : memref<1x1x256xf32, #tpu.memory_space<vmem>>, vector<1x1x256xf32>
    %132 = vector.shape_cast %131 : vector<1x1x256xf32> to vector<1x256xf32>
    %133 = vector.broadcast %132 : vector<1x256xf32> to vector<8x256xf32>
    %134 = arith.addf %130, %133 : vector<8x256xf32>
    %cst_57 = arith.constant 5.000000e-01 : f32
    %135 = vector.broadcast %cst_57 : f32 to vector<8x256xf32>
    %136 = arith.mulf %135, %134 : vector<8x256xf32>
    %cst_58 = arith.constant 4.471500e-02 : f32
    %137 = vector.broadcast %cst_58 : f32 to vector<8x256xf32>
    %138 = arith.mulf %137, %134 : vector<8x256xf32>
    %139 = arith.mulf %138, %134 : vector<8x256xf32>
    %140 = arith.mulf %139, %134 : vector<8x256xf32>
    %141 = arith.addf %134, %140 : vector<8x256xf32>
    %cst_59 = arith.constant 0.797884583 : f32
    %142 = vector.broadcast %cst_59 : f32 to vector<8x256xf32>
    %143 = arith.mulf %142, %141 : vector<8x256xf32>
    %144 = math.tanh %143 : vector<8x256xf32>
    %cst_60 = arith.constant 1.000000e+00 : f32
    %145 = vector.broadcast %cst_60 : f32 to vector<8x256xf32>
    %146 = arith.addf %145, %144 : vector<8x256xf32>
    %147 = arith.mulf %136, %146 : vector<8x256xf32>
    %148 = arith.truncf %147 : vector<8x256xf32> to vector<8x256xbf16>
    %c0_61 = arith.constant 0 : index
    %c0_62 = arith.constant 0 : index
    %c0_63 = arith.constant 0 : index
    %149 = vector.load %arg13[%c0_61, %c0_62, %c0_63] : memref<1x256x128xbf16, #tpu.memory_space<vmem>>, vector<1x256x128xbf16>
    %150 = vector.shape_cast %149 : vector<1x256x128xbf16> to vector<256x128xbf16>
    %cst_64 = arith.constant dense<0.000000e+00> : vector<8x128xf32>
    %151 = tpu.matmul %148, %150, %cst_64 {dimension_numbers = #tpu.dot_dimension_numbers<[1], [0], [0], [1], [0, 0, 1, 1], [], []>} : vector<8x256xbf16>, vector<256x128xbf16>, vector<8x128xf32> -> vector<8x128xf32>
    %c0_65 = arith.constant 0 : index
    %c0_66 = arith.constant 0 : index
    %c0_67 = arith.constant 0 : index
    %152 = vector.load %arg14[%c0_65, %c0_66, %c0_67] : memref<1x1x128xf32, #tpu.memory_space<vmem>>, vector<1x1x128xf32>
    %153 = vector.shape_cast %152 : vector<1x1x128xf32> to vector<1x128xf32>
    %154 = vector.broadcast %153 : vector<1x128xf32> to vector<8x128xf32>
    %155 = arith.addf %151, %154 : vector<8x128xf32>
    %156 = arith.addf %155, %100 : vector<8x128xf32>
    %c0_68 = arith.constant 0 : index
    %c0_69 = arith.constant 0 : index
    %157 = vector.load %arg18[%c0_68, %c0_69] : memref<8x128xf32, #tpu.memory_space<vmem>>, vector<8x128xf32>
    tpu.vector_store %arg18[%c0_68, %c0_69], %156 {strides = array<i32>} : memref<8x128xf32, #tpu.memory_space<vmem>>, vector<8x128xf32>,
    %c1_i32 = arith.constant 1 : i32
    %158 = arith.cmpi eq, %arg0, %c1_i32 : i32
    %159 = arith.extui %158 : i1 to i32
    %c0_i32_70 = arith.constant 0 : i32
    %160 = arith.cmpi ne, %159, %c0_i32_70 : i32
    scf.if %160 {
      %c0_71 = arith.constant 0 : index
      %c0_72 = arith.constant 0 : index
      %161 = vector.load %arg15[%c0_71, %c0_72] : memref<1x128xf32, #tpu.memory_space<vmem>>, vector<1x128xf32>
      %c0_73 = arith.constant 0 : index
      %c0_74 = arith.constant 0 : index
      %162 = vector.load %arg16[%c0_73, %c0_74] : memref<1x128xf32, #tpu.memory_space<vmem>>, vector<1x128xf32>
      %cst_75 = arith.constant dense<0.000000e+00> : vector<8xf32>
      %163 = vector.multi_reduction <add>, %156, %cst_75 [1] : vector<8x128xf32> to vector<8xf32>
      %164 = vector.shape_cast %163 : vector<8xf32> to vector<8x1xf32>
      %cst_76 = arith.constant 1.280000e+02 : f32
      %165 = vector.broadcast %cst_76 : f32 to vector<8x1xf32>
      %166 = arith.divf %164, %165 : vector<8x1xf32>
      %167 = vector.broadcast %166 : vector<8x1xf32> to vector<8x128xf32>
      %168 = arith.subf %156, %167 : vector<8x128xf32>
      %169 = arith.mulf %168, %168 : vector<8x128xf32>
      %cst_77 = arith.constant dense<0.000000e+00> : vector<8xf32>
      %170 = vector.multi_reduction <add>, %169, %cst_77 [1] : vector<8x128xf32> to vector<8xf32>
      %171 = vector.shape_cast %170 : vector<8xf32> to vector<8x1xf32>
      %cst_78 = arith.constant 1.280000e+02 : f32
      %172 = vector.broadcast %cst_78 : f32 to vector<8x1xf32>
      %173 = arith.divf %171, %172 : vector<8x1xf32>
      %174 = vector.broadcast %166 : vector<8x1xf32> to vector<8x128xf32>
      %175 = arith.subf %156, %174 : vector<8x128xf32>
      %cst_79 = arith.constant 9.99999974E-6 : f32
      %176 = vector.broadcast %cst_79 : f32 to vector<8x1xf32>
      %177 = arith.addf %173, %176 : vector<8x1xf32>
      %178 = math.rsqrt %177 : vector<8x1xf32>
      %179 = vector.broadcast %178 : vector<8x1xf32> to vector<8x128xf32>
      %180 = arith.mulf %175, %179 : vector<8x128xf32>
      %181 = vector.broadcast %161 : vector<1x128xf32> to vector<8x128xf32>
      %182 = arith.mulf %180, %181 : vector<8x128xf32>
      %183 = vector.broadcast %162 : vector<1x128xf32> to vector<8x128xf32>
      %184 = arith.addf %182, %183 : vector<8x128xf32>
      %c0_80 = arith.constant 0 : index
      %c0_81 = arith.constant 0 : index
      %185 = vector.load %arg17[%c0_80, %c0_81] : memref<8x128xf32, #tpu.memory_space<vmem>>, vector<8x128xf32>
      tpu.vector_store %arg17[%c0_80, %c0_81], %184 {strides = array<i32>} : memref<8x128xf32, #tpu.memory_space<vmem>>, vector<8x128xf32>,
    } else {
    }
    return
  }
  func.func @transform_0(%arg0: i32) -> (i32, i32) {
    %c0_i32 = arith.constant 0 : i32
    %c0_i32_0 = arith.constant 0 : i32
    %c0_i32_1 = arith.constant 0 : i32
    return %c0_i32, %c0_i32_0 : i32, i32
  }
  func.func @transform_1(%arg0: i32) -> (i32, i32, i32) {
    %c0_i32 = arith.constant 0 : i32
    %c0_i32_0 = arith.constant 0 : i32
    %c0_i32_1 = arith.constant 0 : i32
    return %arg0, %c0_i32, %c0_i32_0 : i32, i32, i32
  }
  func.func @transform_2(%arg0: i32) -> (i32, i32, i32) {
    %c0_i32 = arith.constant 0 : i32
    %c0_i32_0 = arith.constant 0 : i32
    %c0_i32_1 = arith.constant 0 : i32
    return %arg0, %c0_i32, %c0_i32_0 : i32, i32, i32
  }
  func.func @transform_3(%arg0: i32) -> (i32, i32, i32) {
    %c0_i32 = arith.constant 0 : i32
    %c0_i32_0 = arith.constant 0 : i32
    %c0_i32_1 = arith.constant 0 : i32
    return %arg0, %c0_i32, %c0_i32_0 : i32, i32, i32
  }
  func.func @transform_4(%arg0: i32) -> (i32, i32, i32) {
    %c0_i32 = arith.constant 0 : i32
    %c0_i32_0 = arith.constant 0 : i32
    %c0_i32_1 = arith.constant 0 : i32
    return %arg0, %c0_i32, %c0_i32_0 : i32, i32, i32
  }
  func.func @transform_5(%arg0: i32) -> (i32, i32, i32) {
    %c0_i32 = arith.constant 0 : i32
    %c0_i32_0 = arith.constant 0 : i32
    %c0_i32_1 = arith.constant 0 : i32
    return %arg0, %c0_i32, %c0_i32_0 : i32, i32, i32
  }
  func.func @transform_6(%arg0: i32) -> (i32, i32, i32) {
    %c0_i32 = arith.constant 0 : i32
    %c0_i32_0 = arith.constant 0 : i32
    %c0_i32_1 = arith.constant 0 : i32
    return %arg0, %c0_i32, %c0_i32_0 : i32, i32, i32
  }
  func.func @transform_7(%arg0: i32) -> (i32, i32, i32) {
    %c0_i32 = arith.constant 0 : i32
    %c0_i32_0 = arith.constant 0 : i32
    %c0_i32_1 = arith.constant 0 : i32
    return %arg0, %c0_i32, %c0_i32_0 : i32, i32, i32
  }
  func.func @transform_8(%arg0: i32) -> (i32, i32, i32) {
    %c0_i32 = arith.constant 0 : i32
    %c0_i32_0 = arith.constant 0 : i32
    %c0_i32_1 = arith.constant 0 : i32
    return %arg0, %c0_i32, %c0_i32_0 : i32, i32, i32
  }
  func.func @transform_9(%arg0: i32) -> (i32, i32, i32) {
    %c0_i32 = arith.constant 0 : i32
    %c0_i32_0 = arith.constant 0 : i32
    %c0_i32_1 = arith.constant 0 : i32
    return %arg0, %c0_i32, %c0_i32_0 : i32, i32, i32
  }
  func.func @transform_10(%arg0: i32) -> (i32, i32, i32) {
    %c0_i32 = arith.constant 0 : i32
    %c0_i32_0 = arith.constant 0 : i32
    %c0_i32_1 = arith.constant 0 : i32
    return %arg0, %c0_i32, %c0_i32_0 : i32, i32, i32
  }
  func.func @transform_11(%arg0: i32) -> (i32, i32, i32) {
    %c0_i32 = arith.constant 0 : i32
    %c0_i32_0 = arith.constant 0 : i32
    %c0_i32_1 = arith.constant 0 : i32
    return %arg0, %c0_i32, %c0_i32_0 : i32, i32, i32
  }
  func.func @transform_12(%arg0: i32) -> (i32, i32, i32) {
    %c0_i32 = arith.constant 0 : i32
    %c0_i32_0 = arith.constant 0 : i32
    %c0_i32_1 = arith.constant 0 : i32
    return %arg0, %c0_i32, %c0_i32_0 : i32, i32, i32
  }
  func.func @transform_13(%arg0: i32) -> (i32, i32, i32) {
    %c0_i32 = arith.constant 0 : i32
    %c0_i32_0 = arith.constant 0 : i32
    %c0_i32_1 = arith.constant 0 : i32
    return %arg0, %c0_i32, %c0_i32_0 : i32, i32, i32
  }
  func.func @transform_14(%arg0: i32) -> (i32, i32) {
    %c0_i32 = arith.constant 0 : i32
    %c0_i32_0 = arith.constant 0 : i32
    %c0_i32_1 = arith.constant 0 : i32
    return %c0_i32, %c0_i32_0 : i32, i32
  }
  func.func @transform_15(%arg0: i32) -> (i32, i32) {
    %c0_i32 = arith.constant 0 : i32
    %c0_i32_0 = arith.constant 0 : i32
    %c0_i32_1 = arith.constant 0 : i32
    return %c0_i32, %c0_i32_0 : i32, i32
  }
  func.func @transform_16(%arg0: i32) -> (i32, i32) {
    %c0_i32 = arith.constant 0 : i32
    %c0_i32_0 = arith.constant 0 : i32
    %c0_i32_1 = arith.constant 0 : i32
    return %c0_i32, %c0_i32_0 : i32, i32
  }
}

</mosaic_0001>

<bundles_post_ra>
// kernel: tpu_custom_call.1
= control target key start
LH: loop header
LB: loop body
LE: loop exit
PB: predicated region body
PF: predicated region fallthrough
CT: control target
= control target key end

     0   :  { %s4287_s0 = inlined_call_operand.hbm [shape: f32[8,128], index: 0, kind: input, shape index: {}]   ;;  %s4288_s1 = inlined_call_operand.hbm [shape: f32[2,8,256], index: 1, kind: input, shape index: {}]   ;;  %s4289_s2 = inlined_call_operand.vmem [shape: f32[2,1,128], index: 2, kind: input, shape index: {}]   ;;  %s4290_s3 = inlined_call_operand.vmem [shape: f32[2,1,128], index: 3, kind: input, shape index: {}]   ;;  %s4291_s4 = inlined_call_operand.hbm [shape: bf16[2,128,256], index: 4, kind: input, shape index: {}]   ;;  %s4292_s5 = inlined_call_operand.hbm [shape: bf16[2,256,512], index: 5, kind: input, shape index: {}]   ;;  %s4293_s6 = inlined_call_operand.hbm [shape: bf16[2,256,128], index: 6, kind: input, shape index: {}]   ;;  %s4294_s7 = inlined_call_operand.vmem [shape: f32[2,1,128], index: 7, kind: input, shape index: {}]   ;;  %s4295_s8 = inlined_call_operand.vmem [shape: f32[2,1,128], index: 8, kind: input, shape index: {}]   ;;  %s4296_s9 = inlined_call_operand.vmem [shape: f32[2,1,128], index: 9, kind: input, shape index: {}]   ;;  %s4297_s10 = inlined_call_operand.hbm [shape: bf16[2,128,256], index: 10, kind: input, shape index: {}]   ;;  %s4298_s11 = inlined_call_operand.vmem [shape: f32[2,1,256], index: 11, kind: input, shape index: {}]   ;;  %s4299_s12 = inlined_call_operand.hbm [shape: bf16[2,256,128], index: 12, kind: input, shape index: {}]   ;;  %s4300_s13 = inlined_call_operand.vmem [shape: f32[2,1,128], index: 13, kind: input, shape index: {}]   ;;  %s4301_s14 = inlined_call_operand.vmem [shape: f32[1,128], index: 14, kind: input, shape index: {}]   ;;  %s4302_s15 = inlined_call_operand.vmem [shape: f32[1,128], index: 15, kind: input, shape index: {}]   ;;  %s4303_s16 = inlined_call_operand.hbm [shape: f32[8,128], index: 16, kind: output, shape index: {}]  }
   0x1   :  { %4322 = sst [smem:[#allocation25_spill]] %s4287_s0 }
   0x2   :  { %4323 = sst [smem:[#allocation26_spill]] %s4288_s1 }
   0x3   :  { %4324 = sst [smem:[#allocation27_spill]] %s4291_s4 }
   0x4   :  { %4325 = sst [smem:[#allocation28_spill]] %s4292_s5 }
   0x5   :  { %4326 = sst [smem:[#allocation29_spill]] %s4293_s6 }
   0x6   :  { %4327 = sst [smem:[#allocation30_spill]] %s4294_s7 }
   0x7   :  { %4328 = sst [smem:[#allocation31_spill]] %s4295_s8 }
   0x8   :  { %4329 = sst [smem:[#allocation32_spill]] %s4296_s9 }
   0x9   :  { %4330 = sst [smem:[#allocation33_spill]] %s4297_s10 }
   0xa   :  { %4331 = sst [smem:[#allocation34_spill]] %s4298_s11 }
   0xb   :  { %4332 = sst [smem:[#allocation35_spill]] %s4299_s12 }
   0xc   :  { %4333 = sst [smem:[#allocation36_spill]] %s4300_s13 }
   0xd   :  { %4334 = sst [smem:[#allocation37_spill]] %s4301_s14 }
   0xe   :  { %4335 = sst [smem:[#allocation38_spill]] %s4302_s15 }
   0xf   :  { %4336 = sst [smem:[#allocation39_spill]] %s4303_s16 }
  0x10   :  { %21 = vsyncpa [#allocation4], 0 }
  0x11   :  { %22 = vsyncpa [#allocation7], 0 }
  0x12   :  { %24 = vsyncpa [#allocation7 + $0x1], 0 }
  0x13   :  { %25 = vsyncpa [#allocation10], 0 }
  0x14   :  { %27 = vsyncpa [#allocation10 + $0x1], 0 }
  0x15   :  { %28 = vsyncpa [#allocation13], 0 }
  0x16   :  { %30 = vsyncpa [#allocation13 + $0x1], 0 }
  0x17   :  { %31 = vsyncpa [#allocation5], 0  ;;  %s3627_s21 = smov 0   ;;  %s3629_s22 = smov 0  }
  0x18   :  { %s3631_s23 = smov 0   ;;  %s3633_s24 = smov 0  }
  0x19 LB: > { %4337 = sst [smem:[#allocation21_spill]] %s3514_s22  ;;  %s3648_s25 = sadd.s32 1, %s3522_s24   ;;  %s3522_s24 = sphi %s3633_s24, %s4380_s24   ;;  %s3518_s23 = sphi %s3631_s23, %s4383_s23   ;;  %s3514_s22 = sphi %s3629_s22, %s4382_s22   ;;  %s3510_s21 = sphi %s3627_s21, %s4381_s21  }
  0x1a   : > { %4338 = sst [smem:[#allocation22_spill]] %s3518_s23  ;;  %s65_s26 = sadd.s32 1, %s3518_s23 }
  0x1b   : > { %4339 = sst [smem:[#allocation23_spill]] %s3648_s25  ;;  %s62_s27 = ssub.s32 %s3522_s24, %s3648_s25 }
  0x1c   : > { %p72_p0 = scmp.ne.s32.totalorder %s3518_s23, %s3514_s22  ;;  %p63_p1 = scmp.eq.s32.totalorder %s62_s27, 0 }
  0x1d   : > { %p73_p2 = scmp.eq.s32.totalorder %s3522_s24, 0  ;;  %p2982_p3 = scmp.lt.s32.totalorder %s3522_s24, 2 }
  0x1e   : > { %s3658_s28 = scalar_select %p63_p1, %s3518_s23, %s65_s26  }
  0x1f   : > { %p74_p4 = por %p73_p2, %p72_p0  ;;  %s3661_s29 = sand.u32 1, %s3522_s24  }
  0x20   : > { %4340 = sst [smem:[#allocation24_spill]] %s3658_s28  ;;  %s3664_s30 = sand.u32 1, %s3518_s23  }
  0x21   : > { %s2639_s0 = sshll.u32 %s3664_s30, 4  ;;  %s2816_s17 = sshll.u32 %s3522_s24, 8 }
  0x22   : > { %s4341_s1 = sld [smem:[#allocation26_spill]]  ;;  %s498_s26 = scalar_lea.vmem [#allocation6], %s2639_s0 }
  0x23   : > { %s506_s27 = sshll.u32 %s498_s26, 4  ;;  %p3673_p5 = pnand %p2982_p3, %p74_p4  ;;  %s3677_s27 = int_to_ptr.vmem [resolvable:$true] %s506_s27 }
  0x24   : > { %s3680_s23 = sshll.u32 %s3664_s30, 7 }
  0x25   : > { %s4342_s28 = scalar_select %p3673_p5, 1, 0 }
  0x26   : > { %p3687_p7 = pneg %p3673_p5 }
  0x28   : > { %s3671_s20 = scalar_lea.hbm %s4341_s1, %s2816_s17  ;;  %s3243_s19 = scalar_lea.hbm %s4341_s1, 512 }
  0x29   : > { %s3238_s16 = scalar_lea.hbm %s3671_s20, 256  ;;  %p3244_p10 = scmp.lt.u32.totalorder %s3671_s20, %s4341_s1 }
  0x2a   : > { %p3239_p6 = scmp.ne.s32.totalorder %s3671_s20, %s3238_s16  ;;  %p3245_p11 = scmp.lt.u32.totalorder %s3243_s19, %s3238_s16 }
  0x2b   : > { %s4343_s17 = scalar_select %p3687_p7, 1, 0 }
  0x2c   : > { %p3241_p8 = pnand %p3687_p7, %p3239_p6  ;;  %p3246_p12 = por %p3245_p11, %p3244_p10 }
  0x2d   : > { %p3247_p13 = scmp.lt.u32.totalorder %s3238_s16, %s3671_s20 }
  0x2e   : > { %p3242_p9 = pneg %p3241_p8 }
  0x2f   : > { %p3248_p0 = por %p3247_p13, %p3246_p12 }
  0x31   : > { %p3249_p1 = pnand %p3248_p0, %p3242_p9 }
  0x33   : > { %3252 = shalt.err (!%p3249_p1)
}
  0x34   : > { %s3253_s25 = scalar_lea.vmem %s3677_s27, 256  ;;  %s3524_s0 = smov [#allocation6]  }
  0x35   : > { %p3254_p2 = scmp.ne.s32.totalorder %s3677_s27, %s3253_s25  ;;  %s3258_s18 = sshll.u32 %s3524_s0, 4  ;;  %s3259_s18 = int_to_ptr.vmem [resolvable:$false] %s3258_s18 }
  0x36   : > { %s3260_s15 = scalar_lea.vmem %s3259_s18, 512  ;;  %p3261_p6 = scmp.lt.s32.totalorder %s3677_s27, %s3259_s18 }
  0x37   : > { %p3256_p3 = pnand %p3254_p2, %p3687_p7  ;;  %p3262_p8 = scmp.lt.s32.totalorder %s3260_s15, %s3253_s25 }
  0x39   : > { %p3257_p4 = pneg %p3256_p3  ;;  %p3263_p10 = por %p3262_p8, %p3261_p6 }
  0x3b   : > { %p3264_p11 = pnand %p3263_p10, %p3257_p4 }
  0x3d   : > { %3267 = shalt.err (!%p3264_p11)
}
  0x3e   : > { %s4344_s16 = scalar_lea.sflag [#allocation7], %s3661_s29  ;;  %s2645_s19 = sshll.u32 %s3664_s30, 9 }
  0x3f   : > { %2965 = dma.hbm_to_vmem [thread:$0]  (!%p3673_p5), %s3671_s20, 256, %s3677_s27, %s4344_s16  }
  0x40   : > { %s2818_s26 = sshll.u32 %s3522_s24, 13  ;;  %s4345_s5 = sld [smem:[#allocation28_spill]] }
  0x41   : > { %s550_s15 = scalar_lea.vmem [#allocation9], %s2645_s19  ;;  %s3722_s14 = sshll.u32 %s3522_s24, 11 }
  0x42   : > { %s557_s1 = sshll.u32 %s550_s15, 4  ;;  %s4310_s13 = scalar_lea.sflag [#allocation10], %s3661_s29  ;;  %s3719_s1 = int_to_ptr.vmem [resolvable:$true] %s557_s1 }
  0x46   : > { %s3717_s25 = scalar_lea.hbm %s4345_s5, %s2818_s26  ;;  %s3273_s27 = scalar_lea.hbm %s4345_s5, 16384 }
  0x47   : > { %s3268_s11 = scalar_lea.hbm %s3717_s25, 8192  ;;  %p3274_p0 = scmp.lt.u32.totalorder %s3717_s25, %s4345_s5 }
  0x48   : > { %p3269_p9 = scmp.ne.s32.totalorder %s3717_s25, %s3268_s11  ;;  %p3275_p1 = scmp.lt.u32.totalorder %s3273_s27, %s3268_s11 }
  0x49   : > { %p3277_p3 = scmp.lt.u32.totalorder %s3268_s11, %s3717_s25 }
  0x4a   : > { %p3271_p12 = pnand %p3269_p9, %p3687_p7  ;;  %p3276_p2 = por %p3275_p1, %p3274_p0 }
  0x4c   : > { %p3272_p13 = pneg %p3271_p12  ;;  %p3278_p4 = por %p3277_p3, %p3276_p2 }
  0x4e   : > { %p3279_p6 = pnand %p3278_p4, %p3272_p13 }
  0x50   : > { %3282 = shalt.err (!%p3279_p6)
}
  0x51   : > { %s3283_s19 = scalar_lea.vmem %s3719_s1, 8192  ;;  %s3525_s0 = smov [#allocation9]  }
  0x52   : > { %p3284_p8 = scmp.ne.s32.totalorder %s3719_s1, %s3283_s19  ;;  %s3288_s18 = sshll.u32 %s3525_s0, 4  ;;  %s3289_s18 = int_to_ptr.vmem [resolvable:$false] %s3288_s18 }
  0x53   : > { %s3290_s15 = scalar_lea.vmem %s3289_s18, 16384  ;;  %p3291_p9 = scmp.lt.s32.totalorder %s3719_s1, %s3289_s18 }
  0x54   : > { %p3286_p10 = pnand %p3284_p8, %p3687_p7  ;;  %p3292_p12 = scmp.lt.s32.totalorder %s3290_s15, %s3283_s19 }
  0x56   : > { %p3287_p11 = pneg %p3286_p10  ;;  %p3293_p0 = por %p3292_p12, %p3291_p9 }
  0x58   : > { %p3294_p1 = pnand %p3293_p0, %p3287_p11 }
  0x5a   : > { %3297 = shalt.err (!%p3294_p1)
}
  0x5b   : > { %s3526_s11 = smov 256   ;;  %s3527_s30 = smov 16  }
  0x5c   : > { %2971 = dma.hbm_to_vmem [thread:$0]  (!%p3673_p5), %s3717_s25, 8192, %s3719_s1, %s4310_s13, %s3526_s11, %s3526_s11, %s3527_s30  }
  0x5d   : > { %s4346_s10 = sld [smem:[#allocation33_spill]]  ;;  %s610_s26 = scalar_lea.vmem [#allocation12], %s3680_s23 }
  0x5e   : > { %s617_s19 = sshll.u32 %s610_s26, 4  ;;  %s4309_s0 = scalar_lea.sflag [#allocation13], %s3661_s29  ;;  %s3755_s19 = int_to_ptr.vmem [resolvable:$true] %s617_s19 }
  0x63   : > { %s3752_s16 = scalar_lea.hbm %s4346_s10, %s3722_s14  ;;  %s3303_s15 = scalar_lea.hbm %s4346_s10, 4096 }
  0x64   : > { %s3298_s18 = scalar_lea.hbm %s3752_s16, 2048  ;;  %p3304_p4 = scmp.lt.u32.totalorder %s3752_s16, %s4346_s10 }
  0x65   : > { %p3299_p13 = scmp.ne.s32.totalorder %s3752_s16, %s3298_s18  ;;  %p3305_p6 = scmp.lt.u32.totalorder %s3303_s15, %s3298_s18 }
  0x66   : > { %p3307_p10 = scmp.lt.u32.totalorder %s3298_s18, %s3752_s16 }
  0x67   : > { %p3301_p2 = pnand %p3299_p13, %p3687_p7  ;;  %p3306_p8 = por %p3305_p6, %p3304_p4 }
  0x69   : > { %p3302_p3 = pneg %p3301_p2  ;;  %p3308_p11 = por %p3307_p10, %p3306_p8 }
  0x6b   : > { %p3309_p9 = pnand %p3308_p11, %p3302_p3 }
  0x6d   : > { %3312 = shalt.err (!%p3309_p9)
}
  0x6e   : > { %s3313_s20 = scalar_lea.vmem %s3755_s19, 2048  ;;  %s3528_s27 = smov [#allocation12]  }
  0x6f   : > { %p3314_p12 = scmp.ne.s32.totalorder %s3755_s19, %s3313_s20  ;;  %s3318_s26 = sshll.u32 %s3528_s27, 4  ;;  %s3319_s26 = int_to_ptr.vmem [resolvable:$false] %s3318_s26 }
  0x70   : > { %s3320_s1 = scalar_lea.vmem %s3319_s26, 4096  ;;  %p3321_p13 = scmp.lt.s32.totalorder %s3755_s19, %s3319_s26 }
  0x71   : > { %p3316_p0 = pnand %p3314_p12, %p3687_p7  ;;  %p3322_p2 = scmp.lt.s32.totalorder %s3320_s1, %s3313_s20 }
  0x73   : > { %p3317_p1 = pneg %p3316_p0  ;;  %p3323_p4 = por %p3322_p2, %p3321_p13 }
  0x75   : > { %p3324_p6 = pnand %p3323_p4, %p3317_p1 }
  0x77   : > { %3327 = shalt.err (!%p3324_p6)
}
  0x78   : > { %s4311_s18 = smov 128   ;;  %s3530_s25 = smov 8  }
  0x79   : > { %2977 = dma.hbm_to_vmem [thread:$0]  (!%p3673_p5), %s3752_s16, 2048, %s3755_s19, %s4309_s0, %s4311_s18, %s4311_s18, %s3530_s25  }
  0x7a   : > { %s3785_s15 = sadd.s32 4294967295, %s3522_s24   ;;  %p78_p3 = scmp.ne.s32.totalorder %s3514_s22, %s3510_s21 }
  0x7b   : > { %p4312_p8 = scmp.eq.s32.totalorder %s3785_s15, 0  ;;  %p2636_p10 = scmp.ge.s32.totalorder %s3522_s24, 1 }
  0x7c   : > { %p464_p11 = scmp.lt.s32.totalorder %s3522_s24, 3  ;;  %s3531_s16 = smov [#allocation3]  }
  0x7d   : > { %p3795_p12 = por %p4312_p8, %p78_p3  ;;  %s477_s19 = sshll.u32 %s3531_s16, 4  ;;  %s3803_s19 = int_to_ptr.vmem [resolvable:$true] %s477_s19 }
  0x7e   : > { %p3799_p0 = pnand %p2636_p10, %p464_p11  ;;  %s4349_s4 = sld [smem:[#allocation27_spill]] }
  0x7f   : > { %s4347_s11 = scalar_select %p3795_p12, 1, 0 }
  0x80   : > { %s4348_s30 = scalar_select %p3799_p0, 1, 0 }
  0x81   : > { %p2958_p1 = pneg %p3799_p0  ;;  %s529_s27 = scalar_lea.vmem [#allocation8], %s3680_s23 }
  0x82   : > { %s536_s26 = sshll.u32 %s529_s27, 4  ;;  %s3820_s26 = int_to_ptr.vmem [resolvable:$true] %s536_s26 }
  0x83   : > { %p3816_p13 = pnand %p2958_p1, %p4312_p8 }
  0x84   : > { %s3811_s24 = scalar_lea.hbm %s4349_s4, %s3722_s14  ;;  %s3333_s0 = scalar_lea.hbm %s4349_s4, 4096 }
  0x85   : > { %s4350_s1 = scalar_select %p3816_p13, 1, 0 }
  0x86   : > { %s3328_s16 = scalar_lea.hbm %s3811_s24, 2048  ;;  %p3334_p3 = scmp.lt.u32.totalorder %s3811_s24, %s4349_s4 }
  0x87   : > { %p3329_p2 = scmp.ne.s32.totalorder %s3811_s24, %s3328_s16  ;;  %p3335_p10 = scmp.lt.u32.totalorder %s3333_s0, %s3328_s16 }
  0x88   : > { %p3337_p1 = scmp.lt.u32.totalorder %s3328_s16, %s3811_s24 }
  0x89   : > { %p3331_p4 = pnand %p3329_p2, %p3687_p7  ;;  %p3336_p11 = por %p3335_p10, %p3334_p3 }
  0x8b   : > { %p3332_p6 = pneg %p3331_p4  ;;  %p3338_p9 = por %p3337_p1, %p3336_p11 }
  0x8d   : > { %p3339_p8 = pnand %p3338_p9, %p3332_p6 }
  0x8f   : > { %3342 = shalt.err (!%p3339_p8)
}
  0x90   : > { %s3343_s27 = scalar_lea.vmem %s3820_s26, 2048  ;;  %s3532_s21 = smov [#allocation8]  }
  0x91   : > { %p3344_p2 = scmp.ne.s32.totalorder %s3820_s26, %s3343_s27  ;;  %s3348_s20 = sshll.u32 %s3532_s21, 4  ;;  %s3349_s20 = int_to_ptr.vmem [resolvable:$false] %s3348_s20 }
  0x92   : > { %s3350_s13 = scalar_lea.vmem %s3349_s20, 4096  ;;  %p3351_p0 = scmp.lt.s32.totalorder %s3820_s26, %s3349_s20 }
  0x93   : > { %p3346_p4 = pnand %p3344_p2, %p3687_p7  ;;  %p3352_p13 = scmp.lt.s32.totalorder %s3350_s13, %s3343_s27 }
  0x95   : > { %p3347_p12 = pneg %p3346_p4  ;;  %p3353_p3 = por %p3352_p13, %p3351_p0 }
  0x97   : > { %p3354_p10 = pnand %p3353_p3, %p3347_p12 }
  0x99   : > { %3357 = shalt.err (!%p3354_p10)
}
  0x9a   : > { %s4351_s0 = smov 128   ;;  %s4352_s18 = scalar_lea.sflag [#allocation7], %s3661_s29 }
  0x9b   : > { %2968 = dma.hbm_to_vmem [thread:$0]  (!%p3673_p5), %s3811_s24, 2048, %s3820_s26, %s4352_s18, %s4351_s0, %s4351_s0, %s3530_s25  }
  0x9c   : > { %s4353_s6 = sld [smem:[#allocation29_spill]]  ;;  %s4354_s4 = sld [smem:[#allocation25_spill]] }
  0x9d   : > { %p4355_p9 = scmp.ne.s32.totalorder %s4350_s1, 0 }
  0x9f   : > { %p3360_p12 = pneg %p4355_p9 }
  0xa2   : > { %s3852_s20 = scalar_lea.hbm %s4353_s6, %s3722_s14  ;;  %s3358_s5 = scalar_lea.hbm %s4354_s4, 128 }
  0xa3   : > { %p3359_p8 = scmp.ne.s32.totalorder %s4354_s4, %s3358_s5  ;;  %p3365_p6 = scmp.lt.u32.totalorder %s3358_s5, %s4354_s4 }
  0xa5   : > { %p3361_p0 = pnand %p3360_p12, %p3359_p8 }
  0xa7   : > { %p3362_p13 = pneg %p3361_p0 }
  0xa9   : > { %p3367_p11 = pnand %p3365_p6, %p3362_p13 }
  0xab   : > { %3370 = shalt.err (!%p3367_p11)
}
  0xac   : > { %s3371_s25 = scalar_lea.vmem %s3803_s19, 128  ;;  %p3379_p3 = scmp.lt.s32.totalorder %s3803_s19, %s3803_s19 }
  0xad   : > { %p3372_p1 = scmp.ne.s32.totalorder %s3803_s19, %s3371_s25  ;;  %p3380_p10 = scmp.lt.s32.totalorder %s3371_s25, %s3371_s25 }
  0xaf   : > { %p3374_p2 = pnand %p3372_p1, %p3360_p12  ;;  %p3381_p5 = por %p3380_p10, %p3379_p3 }
  0xb1   : > { %p3375_p4 = pneg %p3374_p2 }
  0xb3   : > { %p3382_p7 = pnand %p3381_p5, %p3375_p4 }
  0xb5   : > { %3385 = shalt.err (!%p3382_p7)
}
  0xb6   : > { %2961 = dma.hbm_to_vmem [thread:$0]  (!%p4355_p9), %s4354_s4, 128, %s3803_s19, [#allocation4]  }
  0xb7   : > { %s571_s8 = scalar_lea.vmem [#allocation11], %s3680_s23  ;;  %s3386_s10 = scalar_lea.hbm %s3852_s20, 2048 }
  0xb8   : > { %s578_s9 = sshll.u32 %s571_s8, 4  ;;  %p3387_p5 = scmp.ne.s32.totalorder %s3852_s20, %s3386_s10  ;;  %s3876_s9 = int_to_ptr.vmem [resolvable:$true] %s578_s9 }
  0xb9   : > { %p4356_p7 = scmp.ne.s32.totalorder %s4343_s17, 0  ;;  %s3391_s1 = scalar_lea.hbm %s4353_s6, 4096 }
  0xba   : > { %p3392_p0 = scmp.lt.u32.totalorder %s3852_s20, %s4353_s6  ;;  %p3393_p13 = scmp.lt.u32.totalorder %s3391_s1, %s3386_s10 }
  0xbb   : > { %p3389_p8 = pnand %p3387_p5, %p4356_p7  ;;  %p3395_p9 = scmp.lt.u32.totalorder %s3386_s10, %s3852_s20 }
  0xbc   : > { %p3394_p6 = por %p3393_p13, %p3392_p0 }
  0xbd   : > { %p3390_p12 = pneg %p3389_p8 }
  0xbe   : > { %p3396_p11 = por %p3395_p9, %p3394_p6 }
  0xc0   : > { %p3397_p1 = pnand %p3396_p11, %p3390_p12 }
  0xc2   : > { %3400 = shalt.err (!%p3397_p1)
}
  0xc3   : > { %s3401_s19 = scalar_lea.vmem %s3876_s9, 2048  ;;  %s3533_s16 = smov [#allocation11]  }
  0xc4   : > { %p3402_p2 = scmp.ne.s32.totalorder %s3876_s9, %s3401_s19  ;;  %s3406_s21 = sshll.u32 %s3533_s16, 4  ;;  %s3407_s21 = int_to_ptr.vmem [resolvable:$false] %s3406_s21 }
  0xc5   : > { %s3408_s27 = scalar_lea.vmem %s3407_s21, 4096  ;;  %p3409_p10 = scmp.lt.s32.totalorder %s3876_s9, %s3407_s21 }
  0xc6   : > { %p3404_p4 = pnand %p3402_p2, %p4356_p7  ;;  %p3410_p5 = scmp.lt.s32.totalorder %s3408_s27, %s3401_s19 }
  0xc8   : > { %p3405_p3 = pneg %p3404_p4  ;;  %p3411_p8 = por %p3410_p5, %p3409_p10 }
  0xca   : > { %p3412_p0 = pnand %p3411_p8, %p3405_p3 }
  0xcc   : > { %3415 = shalt.err (!%p3412_p0)
}
  0xcd   : > { %s3534_s13 = smov 64   ;;  %s3535_s25 = smov 4  }
  0xce   : > { %p4357_p12 = scmp.ne.s32.totalorder %s4342_s28, 0  ;;  %s4358_s7 = scalar_lea.sflag [#allocation10], %s3661_s29 }
  0xcf   : > { %s4359_s12 = sld [smem:[#allocation35_spill]]  ;;  %s638_s24 = scalar_lea.vmem [#allocation14], %s3680_s23 }
  0xd0   : > { %2974 = dma.hbm_to_vmem [thread:$0]  (!%p4357_p12), %s3852_s20, 2048, %s3876_s9, %s4358_s7, %s3534_s13, %s3534_s13, %s3535_s25  }
  0xd1   : > { %s645_s26 = sshll.u32 %s638_s24, 4  ;;  %s3911_s26 = int_to_ptr.vmem [resolvable:$true] %s645_s26 }
  0xd5   : > { %s3908_s10 = scalar_lea.hbm %s4359_s12, %s3722_s14  ;;  %s3421_s9 = scalar_lea.hbm %s4359_s12, 4096 }
  0xd6   : > { %s3416_s1 = scalar_lea.hbm %s3908_s10, 2048  ;;  %p3422_p11 = scmp.lt.u32.totalorder %s3908_s10, %s4359_s12 }
  0xd7   : > { %p3417_p13 = scmp.ne.s32.totalorder %s3908_s10, %s3416_s1  ;;  %p3423_p1 = scmp.lt.u32.totalorder %s3421_s9, %s3416_s1 }
  0xd8   : > { %p3425_p4 = scmp.lt.u32.totalorder %s3416_s1, %s3908_s10 }
  0xd9   : > { %p3419_p6 = pnand %p3417_p13, %p4356_p7  ;;  %p3424_p2 = por %p3423_p1, %p3422_p11 }
  0xdb   : > { %p3420_p9 = pneg %p3419_p6  ;;  %p3426_p3 = por %p3425_p4, %p3424_p2 }
  0xdd   : > { %p3427_p10 = pnand %p3426_p3, %p3420_p9 }
  0xdf   : > { %3430 = shalt.err (!%p3427_p10)
}
  0xe0   : > { %s3431_s23 = scalar_lea.vmem %s3911_s26, 2048  ;;  %s3536_s19 = smov [#allocation14]  }
  0xe1   : > { %p3432_p5 = scmp.ne.s32.totalorder %s3911_s26, %s3431_s23  ;;  %s3436_s16 = sshll.u32 %s3536_s19, 4  ;;  %s3437_s16 = int_to_ptr.vmem [resolvable:$false] %s3436_s16 }
  0xe2   : > { %s3438_s21 = scalar_lea.vmem %s3437_s16, 4096  ;;  %p3439_p13 = scmp.lt.s32.totalorder %s3911_s26, %s3437_s16 }
  0xe3   : > { %p3434_p8 = pnand %p3432_p5, %p4356_p7  ;;  %p3440_p6 = scmp.lt.s32.totalorder %s3438_s21, %s3431_s23 }
  0xe5   : > { %p3435_p0 = pneg %p3434_p8  ;;  %p3441_p11 = por %p3440_p6, %p3439_p13 }
  0xe7   : > { %p3442_p1 = pnand %p3441_p11, %p3435_p0 }
  0xe9   : > { %3445 = shalt.err (!%p3442_p1)
}
  0xea   : > { %s4360_s27 = scalar_lea.sflag [#allocation13], %s3661_s29  ;;  %p4361_p7 = scmp.ne.s32.totalorder %s4348_s30, 0 }
  0xeb   : > { %2980 = dma.hbm_to_vmem [thread:$0]  (!%p4357_p12), %s3908_s10, 2048, %s3911_s26, %s4360_s27, %s3534_s13, %s3534_s13, %s3535_s25  }
  0xec   : > { %663 = sbr.rel (%p4361_p7) target bundleno = 3035 (0xbdb), region = 84  ;;  %p4362_p9 = scmp.eq.s32.totalorder (!%p4361_p7), %s3785_s15, 0 }
  0xf3   : > { %3489 = dma.done.wait (%p4362_p9), [#allocation4], 128   ;;  %p4363_p2 = pmov %p4362_p9 }
  0xf4   : > { %s669_s28 = sand.u32 1, %s3785_s15   ;;  %s671_s17 = sand.u32 1, %s3514_s22  }
  0xf5   : > { %3491 = vsyncadd (%p4363_p2), [#allocation4], 4294967168  ;;  %s2659_s7 = sshll.u32 %s671_s17, 4  ;;  %s670_s5 = scalar_lea.sflag [#allocation7], %s669_s28 }
  0xf6   : > { %s3947_s29 = scalar_lea.vmem [#allocation6], %s2659_s7  ;;  %p4364_p4 = scmp.ne.s32.totalorder %s4347_s11, 0 }
  0xf8   : > { %3493 = dma.done.wait (%p4364_p4), %s670_s5, 2304  }
  0xf9   : > { %3495 = vsyncadd (%p4364_p4), %s670_s5, 4294964992  ;;  %s2660_s30 = sshll.u32 %s671_s17, 7  ;;  %s2661_s13 = sshll.u32 %s671_s17, 9 }
  0xfa   : > { %s3953_s25 = scalar_lea.vmem [#allocation8], %s2660_s30  ;;  %s688_s8 = scalar_lea.sflag [#allocation10], %s669_s28 }
  0xfb   : > { %s3955_s10 = scalar_lea.vmem [#allocation9], %s2661_s13 }
  0xfc   : > { %3497 = dma.done.wait (%p4364_p4), %s688_s8, 10240  }
  0xfd   : > { %3499 = vsyncadd (%p4364_p4), %s688_s8, 4294957056  ;;  %s3961_s24 = scalar_lea.vmem [#allocation11], %s2660_s30  ;;  %s706_s26 = scalar_lea.sflag [#allocation13], %s669_s28 }
  0xfe   : > { %s3963_s1 = scalar_lea.vmem [#allocation12], %s2660_s30 }
  0xff   : > { %3501 = dma.done.wait (%p4364_p4), %s706_s26, 4096  }
 0x100   : > { %3503 = vsyncadd (%p4364_p4), %s706_s26, 4294963200  ;;  %p809_p12 = scmp.lt.s32.totalorder %s3785_s15, 1  ;;  %s4365_s21 = sld [smem:[#allocation30_spill]] }
 0x101   : > { %s4366_s7 = sld [smem:[#allocation31_spill]]  ;;  %s4367_s26 = sld [smem:[#allocation32_spill]] }
 0x102   : > { %s3971_s0 = scalar_select %p809_p12, %s3785_s15, 1 }
 0x103   : > { %s4368_s18 = sld [smem:[#allocation34_spill]]  ;;  %s4369_s11 = sld [smem:[#allocation36_spill]] }
 0x104   : > { %s2665_s9 = sshll.u32 %s3971_s0, 1  ;;  %s4003_s19 = scalar_lea.vmem [#allocation14], %s2660_s30 }
 0x105   : > { %p4370_p3 = scmp.ne.s32.totalorder %s3785_s15, 0 }
 0x106   : > { %s817_s27 = scalar_lea.vmem %s4365_s21, %s3971_s0  ;;  %v836_v0 = vld [vmem:[#allocation3] sm:$0xff] (!%p4370_p3) }
 0x107   : > { %s820_s5 = scalar_lea.vmem %s4366_s7, %s3971_s0  ;;  %s823_s20 = scalar_lea.vmem %s4367_s26, %s3971_s0  ;;  %837 = vst [vmem:[#allocation2] sm:$0xff] (!%p4370_p3), %v836_v0 }
 0x108   : > { %835 = sbr.rel (%p4370_p3) target bundleno = 271 (0x10f), region = 116 }
 0x109   : > { %s3997_s12 = scalar_lea.vmem %s4368_s18, %s2665_s9  ;;  %s830_s22 = scalar_lea.vmem %s4369_s11, %s3971_s0 }
 0x10f PF: > { %v4007_v1 = vld [vmem:[#allocation2] sm:$0xff]  ;;  %v840_v17 = vld [vmem:[%s3947_s29 + $0x8] sm:$0xff]  ;;  %v3537_v53 = vmov 0   ;;  %s3538_s4 = smov 64   ;;  %s4371_s30 = scalar_lea.vmem %s4289_s2, %s3971_s0  ;;  %vm1503_vm0 = vcmask 523264   ;;  %vm1569_vm1 = vcmask 261120  }
 0x110   : > { %843 = vadd.xlane.f32.xlu0 %v4007_v1  ;;  %v3035_v2 = vld [vmem:[%s3955_s10 + $0x4] ss:$16 sps:$4 sm:$0xff]   ;;  %v3037_v3 = vld [vmem:[%s3955_s10] ss:$16 sps:$4 sm:$0xff]   ;;  %v4026_v18 = vpack.c.bf16 %v840_v17, %v840_v17  ;;  %998 = vmatprep.mubr.bf16.mxu0 %v3537_v53  ;;  %s4372_s11 = scalar_lea.vmem %s4290_s3, %s3971_s0  ;;  %v3112_v17 = vld [vmem:[%s3955_s10 + $0x2c] ss:$16 sps:$4 sm:$0xff]  }
 0x111   : > { %v3038_v4 = vld [vmem:[%s3955_s10 + $0x24] ss:$16 sps:$4 sm:$0xff]   ;;  %1393 = vmatprep.subr.bf16.mxu1 %v3035_v2  ;;  %v3040_v5 = vld [vmem:[%s3955_s10 + $0x20] ss:$16 sps:$4 sm:$0xff]   ;;  %vm3540_vm2 = vmmov 0   ;;  %p2809_p10 = scmp.ne.s32.totalorder %s3785_s15, 1 }
 0x112   : > { %1394 = vmatpush1.bf16.msra.mxu1 %v3037_v3  ;;  %v3041_v6 = vld [vmem:[%s3955_s10 + $0x44] ss:$16 sps:$4 sm:$0xff]   ;;  %v3043_v7 = vld [vmem:[%s3955_s10 + $0x40] ss:$16 sps:$4 sm:$0xff]   ;;  %1425 = vmatprep.mubr.bf16.mxu1 %v4026_v18  ;;  %s4377_s8 = sld [smem:[#allocation37_spill]] (!%p2809_p10)  ;;  %s4378_s9 = sld [smem:[#allocation38_spill]] (!%p2809_p10) }
 0x113   : > { %1395 = vmatprep.subr.bf16.mxu1 %v3038_v4  ;;  %v3044_v8 = vld [vmem:[%s3955_s10 + $0x64] ss:$16 sps:$4 sm:$0xff]   ;;  %v3046_v9 = vld [vmem:[%s3955_s10 + $0x60] ss:$16 sps:$4 sm:$0xff]  }
 0x114   : > { %v3047_v10 = vld [vmem:[%s3955_s10 + $0x84] ss:$16 sps:$4 sm:$0xff]   ;;  %v3049_v11 = vld [vmem:[%s3955_s10 + $0x80] ss:$16 sps:$4 sm:$0xff]  }
 0x115   : > { %v3050_v12 = vld [vmem:[%s3955_s10 + $0xa4] ss:$16 sps:$4 sm:$0xff]   ;;  %v3052_v13 = vld [vmem:[%s3955_s10 + $0xa0] ss:$16 sps:$4 sm:$0xff]  }
 0x116   : > { %1396 = vmatpush1.bf16.msra.mxu1 %v3040_v5  ;;  %v3053_v14 = vld [vmem:[%s3955_s10 + $0xc4] ss:$16 sps:$4 sm:$0xff]   ;;  %v3055_v15 = vld [vmem:[%s3955_s10 + $0xc0] ss:$16 sps:$4 sm:$0xff]  }
 0x117   : > { %1397 = vmatprep.subr.bf16.mxu1 %v3041_v6  ;;  %v3056_v16 = vld [vmem:[%s3955_s10 + $0xe4] ss:$16 sps:$4 sm:$0xff]   ;;  %v3085_v20 = vld [vmem:[%s3953_s25] ss:$8 sps:$4 sm:$0xff]   ;;  %v3088_v24 = vld [vmem:[%s3953_s25 + $0x10] ss:$8 sps:$4 sm:$0xff]  }
 0x118   : > { %v3083_v19 = vld [vmem:[%s3953_s25 + $0x4] ss:$8 sps:$4 sm:$0xff]   ;;  %v3058_v21 = vld [vmem:[%s3955_s10 + $0xe0] ss:$16 sps:$4 sm:$0xff]   ;;  %v3086_v23 = vld [vmem:[%s3953_s25 + $0x14] ss:$8 sps:$4 sm:$0xff]  }
 0x119   : > { %v3059_v22 = vld [vmem:[%s3955_s10 + $0x104] ss:$16 sps:$4 sm:$0xff]   ;;  %966 = vmatprep.subr.bf16.mxu0 %v3083_v19  ;;  %v3061_v26 = vld [vmem:[%s3955_s10 + $0x100] ss:$16 sps:$4 sm:$0xff]  }
 0x11a   : > { %1398 = vmatpush1.bf16.msra.mxu1 %v3043_v7  ;;  %v3089_v25 = vld [vmem:[%s3953_s25 + $0x24] ss:$8 sps:$4 sm:$0xff]   ;;  %967 = vmatpush1.bf16.msra.mxu0 %v3085_v20  ;;  %v3064_v28 = vld [vmem:[%s3955_s10 + $0x120] ss:$16 sps:$4 sm:$0xff]   ;;  %v3092_v48 = vld [vmem:[%s3953_s25 + $0x34] ss:$8 sps:$4 sm:$0xff]  }
 0x11b   : > { %1399 = vmatprep.subr.bf16.mxu1 %v3044_v8  ;;  %v3062_v27 = vld [vmem:[%s3955_s10 + $0x124] ss:$16 sps:$4 sm:$0xff]   ;;  %968 = vmatprep.subr.bf16.mxu0 %v3086_v23  ;;  %v3067_v30 = vld [vmem:[%s3955_s10 + $0x140] ss:$16 sps:$4 sm:$0xff]   ;;  %v3115_v20 = vld [vmem:[%s3955_s10 + $0x4c] ss:$16 sps:$4 sm:$0xff]  }
 0x11c   : > { %v3065_v29 = vld [vmem:[%s3955_s10 + $0x144] ss:$16 sps:$4 sm:$0xff]   ;;  %v3070_v32 = vld [vmem:[%s3955_s10 + $0x160] ss:$16 sps:$4 sm:$0xff]  }
 0x11d   : > { %v3068_v31 = vld [vmem:[%s3955_s10 + $0x164] ss:$16 sps:$4 sm:$0xff]   ;;  %v3073_v34 = vld [vmem:[%s3955_s10 + $0x180] ss:$16 sps:$4 sm:$0xff]  }
 0x11e   : > { %1400 = vmatpush1.bf16.msra.mxu1 %v3046_v9  ;;  %969 = vmatpush1.bf16.msra.mxu0 %v3088_v24  ;;  %v3071_v33 = vld [vmem:[%s3955_s10 + $0x184] ss:$16 sps:$4 sm:$0xff]   ;;  %v3076_v36 = vld [vmem:[%s3955_s10 + $0x1a0] ss:$16 sps:$4 sm:$0xff]  }
 0x11f   : > { %1401 = vmatprep.subr.bf16.mxu1 %v3047_v10  ;;  %970 = vmatprep.subr.bf16.mxu0 %v3089_v25  ;;  %v3074_v35 = vld [vmem:[%s3955_s10 + $0x1a4] ss:$16 sps:$4 sm:$0xff]   ;;  %v3079_v38 = vld [vmem:[%s3955_s10 + $0x1c0] ss:$16 sps:$4 sm:$0xff]   ;;  %v3113_v25 = vld [vmem:[%s3955_s10 + $0x48] ss:$16 sps:$4 sm:$0xff]  }
 0x120   : > { %v3077_v37 = vld [vmem:[%s3955_s10 + $0x1c4] ss:$16 sps:$4 sm:$0xff]   ;;  %v3082_v40 = vld [vmem:[%s3955_s10 + $0x1e0] ss:$16 sps:$4 sm:$0xff]  }
 0x121   : > { %v3080_v39 = vld [vmem:[%s3955_s10 + $0x1e4] ss:$16 sps:$4 sm:$0xff]   ;;  %v3091_v47 = vld [vmem:[%s3953_s25 + $0x20] ss:$8 sps:$4 sm:$0xff]   ;;  %v3094_v49 = vld [vmem:[%s3953_s25 + $0x30] ss:$8 sps:$4 sm:$0xff]  }
 0x122   : > { %1402 = vmatpush1.bf16.msra.mxu1 %v3049_v11  ;;  %v839_v41 = vld [vmem:[%s3947_s29] sm:$0xff]  ;;  %971 = vmatpush1.bf16.msra.mxu0 %v3091_v47  ;;  %v3148_v47 = vld [vmem:[%s3955_s10 + $0x1ac] ss:$16 sps:$4 sm:$0xff]  }
 0x123   : > { %1403 = vmatprep.subr.bf16.mxu1 %v3050_v12  ;;  %v4052_v42 = vpack.c.bf16 %v839_v41, %v839_v41  ;;  %972 = vmatprep.subr.bf16.mxu0 %v3092_v48  ;;  %v3095_v50 = vld [vmem:[%s3953_s25 + $0x44] ss:$8 sps:$4 sm:$0xff]   ;;  %v3097_v51 = vld [vmem:[%s3953_s25 + $0x40] ss:$8 sps:$4 sm:$0xff]   ;;  %v3098_v52 = vld [vmem:[%s3953_s25 + $0x54] ss:$8 sps:$4 sm:$0xff]  }
 0x124   : > { %v3100_v54 = vld [vmem:[%s3953_s25 + $0x50] ss:$8 sps:$4 sm:$0xff]   ;;  %v3101_v55 = vld [vmem:[%s3953_s25 + $0x64] ss:$8 sps:$4 sm:$0xff]   ;;  %v3103_v56 = vld [vmem:[%s3953_s25 + $0x60] ss:$8 sps:$4 sm:$0xff]  }
 0x125   : > { %v3104_v57 = vld [vmem:[%s3953_s25 + $0x74] ss:$8 sps:$4 sm:$0xff]   ;;  %v3106_v58 = vld [vmem:[%s3953_s25 + $0x70] ss:$8 sps:$4 sm:$0xff]  }
 0x126   : > { %1404 = vmatpush1.bf16.msra.mxu1 %v3052_v13  ;;  %973 = vmatpush1.bf16.msra.mxu0 %v3094_v49  ;;  %v2667_v3 = vld [vmem:[%s4371_s30] ss:$0 sm:$0xff]  ;;  %v3137_v41 = vld [vmem:[%s3955_s10 + $0x148] ss:$16 sps:$4 sm:$0xff]   ;;  %v3151_v49 = vld [vmem:[%s3955_s10 + $0x1cc] ss:$16 sps:$4 sm:$0xff]  }
 0x127   : > { %1405 = vmatprep.subr.bf16.mxu1 %v3053_v14  ;;  %974 = vmatprep.subr.bf16.mxu0 %v3095_v50  ;;  %v2668_v5 = vld [vmem:[%s4372_s11] ss:$0 sm:$0xff]  ;;  %v3146_v48 = vld [vmem:[%s3955_s10 + $0x1a8] ss:$16 sps:$4 sm:$0xff]  }
 0x128   : > { %v3149_v50 = vld [vmem:[%s3955_s10 + $0x1c8] ss:$16 sps:$4 sm:$0xff]  }
 0x12a   : > { %1406 = vmatpush1.bf16.msra.mxu1 %v3055_v15  ;;  %975 = vmatpush1.bf16.msra.mxu0 %v3097_v51  ;;  %v3107_v15 = vld [vmem:[%s3955_s10 + $0x8] ss:$16 sps:$4 sm:$0xff]   ;;  %v3154_v51 = vld [vmem:[%s3955_s10 + $0x1ec] ss:$16 sps:$4 sm:$0xff]  }
 0x12b   : > { %1407 = vmatprep.subr.bf16.mxu1 %v3056_v16  ;;  %976 = vmatprep.subr.bf16.mxu0 %v3098_v52  ;;  %v3109_v16 = vld [vmem:[%s3955_s10 + $0xc] ss:$16 sps:$4 sm:$0xff]   ;;  %v3152_v52 = vld [vmem:[%s3955_s10 + $0x1e8] ss:$16 sps:$4 sm:$0xff]  }
 0x12e   : > { %1408 = vmatpush1.bf16.msra.mxu1 %v3058_v21  ;;  %977 = vmatpush1.bf16.msra.mxu0 %v3100_v54 }
 0x12f   : > { %1409 = vmatprep.subr.bf16.mxu1 %v3059_v22  ;;  %978 = vmatprep.subr.bf16.mxu0 %v3101_v55 }
 0x132   : > { %1410 = vmatpush1.bf16.msra.mxu1 %v3061_v26  ;;  %979 = vmatpush1.bf16.msra.mxu0 %v3103_v56  ;;  %v3118_v26 = vld [vmem:[%s3955_s10 + $0x6c] ss:$16 sps:$4 sm:$0xff]  }
 0x133   : > { %1411 = vmatprep.subr.bf16.mxu1 %v3062_v27  ;;  %980 = vmatprep.subr.bf16.mxu0 %v3104_v57  ;;  %v3116_v27 = vld [vmem:[%s3955_s10 + $0x68] ss:$16 sps:$4 sm:$0xff]  }
 0x136   : > { %1412 = vmatpush1.bf16.msra.mxu1 %v3064_v28  ;;  %981 = vmatpush1.bf16.msra.mxu0 %v3106_v58  ;;  %v3121_v28 = vld [vmem:[%s3955_s10 + $0x8c] ss:$16 sps:$4 sm:$0xff]  }
 0x137   : > { %1413 = vmatprep.subr.bf16.mxu1 %v3065_v29  ;;  %1434 = vmatprep.subr.bf16.mxu0 %v3109_v16  ;;  %v3119_v29 = vld [vmem:[%s3955_s10 + $0x88] ss:$16 sps:$4 sm:$0xff]  }
 0x13a   : > { %1414 = vmatpush1.bf16.msra.mxu1 %v3067_v30  ;;  %v3124_v30 = vld [vmem:[%s3955_s10 + $0xac] ss:$16 sps:$4 sm:$0xff]  }
 0x13b   : > { %1415 = vmatprep.subr.bf16.mxu1 %v3068_v31  ;;  %v3122_v31 = vld [vmem:[%s3955_s10 + $0xa8] ss:$16 sps:$4 sm:$0xff]  }
 0x13e   : > { %1416 = vmatpush1.bf16.msra.mxu1 %v3070_v32  ;;  %v3127_v32 = vld [vmem:[%s3955_s10 + $0xcc] ss:$16 sps:$4 sm:$0xff]  }
 0x13f   : > { %1417 = vmatprep.subr.bf16.mxu1 %v3071_v33  ;;  %v3125_v33 = vld [vmem:[%s3955_s10 + $0xc8] ss:$16 sps:$4 sm:$0xff]  }
 0x142   : > { %1418 = vmatpush1.bf16.msra.mxu1 %v3073_v34  ;;  %v3130_v34 = vld [vmem:[%s3955_s10 + $0xec] ss:$16 sps:$4 sm:$0xff]  }
 0x143   : > { %1419 = vmatprep.subr.bf16.mxu1 %v3074_v35  ;;  %v3128_v35 = vld [vmem:[%s3955_s10 + $0xe8] ss:$16 sps:$4 sm:$0xff]  }
 0x146   : > { %1420 = vmatpush1.bf16.msra.mxu1 %v3076_v36  ;;  %v3133_v36 = vld [vmem:[%s3955_s10 + $0x10c] ss:$16 sps:$4 sm:$0xff]  }
 0x147   : > { %1421 = vmatprep.subr.bf16.mxu1 %v3077_v37  ;;  %v3131_v37 = vld [vmem:[%s3955_s10 + $0x108] ss:$16 sps:$4 sm:$0xff]  }
 0x14a   : > { %1422 = vmatpush1.bf16.msra.mxu1 %v3079_v38  ;;  %v3136_v38 = vld [vmem:[%s3955_s10 + $0x12c] ss:$16 sps:$4 sm:$0xff]  }
 0x14b   : > { %1423 = vmatprep.subr.bf16.mxu1 %v3080_v39  ;;  %v3134_v39 = vld [vmem:[%s3955_s10 + $0x128] ss:$16 sps:$4 sm:$0xff]  }
 0x14e   : > { %1424 = vmatpush1.bf16.msra.mxu1 %v3082_v40  ;;  %v3139_v40 = vld [vmem:[%s3955_s10 + $0x14c] ss:$16 sps:$4 sm:$0xff]  }
 0x151   : > { %1426 = vmatmul.mubr.bf16.vlgmr.msra.gmra.mrb[0].mxu1 %v4052_v42 }
 0x19d   : > { %v844_v43 = vpop.xlane.xlu0 %843 }
 0x19e   : > { %v846_v44 = vmul.f32 0.0078125, %v844_v43  ;;  %v3142_v43 = vld [vmem:[%s3955_s10 + $0x16c] ss:$16 sps:$4 sm:$0xff]  }
 0x1a0   : > { %v847_v45 = vsub.f32 %v4007_v1, %v846_v44  ;;  %v3140_v44 = vld [vmem:[%s3955_s10 + $0x168] ss:$16 sps:$4 sm:$0xff]  }
 0x1a2   : > { %v848_v46 = vmul.f32 %v847_v45, %v847_v45 }
 0x1a4   : > { %849 = vadd.xlane.f32.xlu0 %v848_v46  ;;  %v3143_v46 = vld [vmem:[%s3955_s10 + $0x188] ss:$16 sps:$4 sm:$0xff]  }
 0x224   : > { %v1427_v59 = vpop.f32.mrb[0].mxu1 }
 0x225   : > { %1484 = vrot.lane.b32.xlu1 %v1427_v59, %s3538_s4  ;;  %v1429_v60 = vpop.f32.mrb[1].mxu1 }
 0x226   : > { %v1431_v61 = vpop.f32.mrb[2].mxu1 }
 0x227   : > { %v1432_v62 = vpop.f32.mrb[3].mxu1 }
 0x229   : > { %1488 = vrot.lane.b32.xlu1 %v1429_v60, %s3538_s4 }
 0x231   : > { %v850_v63 = vpop.xlane.xlu0 %849 }
 0x232   : > { %v851_v0 = vmul.f32 0.0078125, %v850_v63 }
 0x234   : > { %v852_v1 = vadd.f32 1e-05, %v851_v0 }
 0x236   : > { %3211 = vrsqrt.f32 %v852_v1 }
 0x240   : > { %v3212_v2 = vpop.eup %3211 }
 0x241   : > { %v854_v4 = vmul.f32 %v3212_v2, %v847_v45  ;;  %v3145_v45 = vld [vmem:[%s3955_s10 + $0x18c] ss:$16 sps:$4 sm:$0xff]  }
 0x243   : > { %v861_v6 = vmul.f32 %v2667_v3, %v854_v4 }
 0x245   : > { %v868_v7 = vadd.f32 %v2668_v5, %v861_v6 }
 0x247   : > { %v869_v8 = vpack.c.bf16 %v868_v7, %v868_v7 }
 0x249   : > { %999 = vmatmul.mubr.bf16.vlgmr.msra.gmra.mrb[0].mxu0 %v869_v8 }
 0x24a   : > { %1466 = vmatprep.mubr.bf16.mxu0 %v4026_v18  ;;  %1435 = vmatpush1.bf16.msra.mxu0 %v3107_v15  ;;  %v3110_v18 = vld [vmem:[%s3955_s10 + $0x28] ss:$16 sps:$4 sm:$0xff]  }
 0x24b   : > { %1436 = vmatprep.subr.bf16.mxu0 %v3112_v17 }
 0x24e   : > { %1437 = vmatpush1.bf16.msra.mxu0 %v3110_v18 }
 0x24f   : > { %1438 = vmatprep.subr.bf16.mxu0 %v3115_v20 }
 0x252   : > { %1439 = vmatpush1.bf16.msra.mxu0 %v3113_v25 }
 0x253   : > { %1440 = vmatprep.subr.bf16.mxu0 %v3118_v26 }
 0x256   : > { %1441 = vmatpush1.bf16.msra.mxu0 %v3116_v27 }
 0x257   : > { %1442 = vmatprep.subr.bf16.mxu0 %v3121_v28 }
 0x25a   : > { %1443 = vmatpush1.bf16.msra.mxu0 %v3119_v29 }
 0x25b   : > { %1444 = vmatprep.subr.bf16.mxu0 %v3124_v30  ;;  %v3155_v30 = vld [vmem:[%s3961_s24] sm:$0xff]  }
 0x25e   : > { %1445 = vmatpush1.bf16.msra.mxu0 %v3122_v31  ;;  %v3539_v31 = vmov 0.0  }
 0x25f   : > { %1446 = vmatprep.subr.bf16.mxu0 %v3127_v32  ;;  %v3157_v32 = vld [vmem:[%s3961_s24 + $0x8] sm:$0xff]  }
 0x262   : > { %1447 = vmatpush1.bf16.msra.mxu0 %v3125_v33  ;;  %v3159_v33 = vld [vmem:[%s3961_s24 + $0x10] sm:$0xff]  }
 0x263   : > { %1448 = vmatprep.subr.bf16.mxu0 %v3130_v34 }
 0x266   : > { %1449 = vmatpush1.bf16.msra.mxu0 %v3128_v35 }
 0x267   : > { %1450 = vmatprep.subr.bf16.mxu0 %v3133_v36 }
 0x26a   : > { %1451 = vmatpush1.bf16.msra.mxu0 %v3131_v37 }
 0x26b   : > { %1452 = vmatprep.subr.bf16.mxu0 %v3136_v38 }
 0x26e   : > { %1453 = vmatpush1.bf16.msra.mxu0 %v3134_v39 }
 0x26f   : > { %1454 = vmatprep.subr.bf16.mxu0 %v3139_v40 }
 0x272   : > { %1455 = vmatpush1.bf16.msra.mxu0 %v3137_v41 }
 0x273   : > { %1456 = vmatprep.subr.bf16.mxu0 %v3142_v43 }
 0x276   : > { %1457 = vmatpush1.bf16.msra.mxu0 %v3140_v44 }
 0x277   : > { %1458 = vmatprep.subr.bf16.mxu0 %v3145_v45 }
 0x27a   : > { %1459 = vmatpush1.bf16.msra.mxu0 %v3143_v46 }
 0x27b   : > { %1460 = vmatprep.subr.bf16.mxu0 %v3148_v47 }
 0x27e   : > { %1461 = vmatpush1.bf16.msra.mxu0 %v3146_v48 }
 0x27f   : > { %1462 = vmatprep.subr.bf16.mxu0 %v3151_v49 }
 0x282   : > { %1463 = vmatpush1.bf16.msra.mxu0 %v3149_v50 }
 0x283   : > { %1464 = vmatprep.subr.bf16.mxu0 %v3154_v51 }
 0x286   : > { %1465 = vmatpush1.bf16.msra.mxu0 %v3152_v52  ;;  %v3156_v52 = vld [vmem:[%s3961_s24 + $0x20] sm:$0xff]  }
 0x287   : > { %2900 = vmatprep.subr.bf16.mxu0 %v3539_v31 }
 0x289   : > { %1467 = vmatmul.mubr.bf16.vlgmr.msra.gmra.mrb[4].mxu0 %v4052_v42 }
 0x28a   : > { %2901 = vmatpush3.bf16.msra.mxu0 %v3155_v30  ;;  %2908 = vmatprep.mubr.msk.bf16.mxu0 %vm3540_vm2, %v3539_v31  ;;  %v3235_v30 = vld [vmem:[#allocation2] sm:$0xff] }
 0x28b   : > { %2902 = vmatprep.subr.bf16.mxu0 %v3539_v31 }
 0x28e   : > { %2903 = vmatpush3.bf16.msra.mxu0 %v3157_v32  ;;  %v3171_v32 = vld [vmem:[%s3963_s1] ss:$8 sps:$4 sm:$0xff]  }
 0x28f   : > { %2904 = vmatprep.subr.bf16.mxu0 %v3539_v31 }
 0x292   : > { %2905 = vmatpush3.bf16.msra.mxu0 %v3159_v33  ;;  %v3173_v33 = vld [vmem:[%s3963_s1 + $0x4] ss:$8 sps:$4 sm:$0xff]  }
 0x293   : > { %2906 = vmatprep.subr.bf16.mxu0 %v3539_v31 }
 0x297   : > { %v1485_v9 = vpop.permute.xlu1 %1484 }
 0x298   : > { %v1501_v10 = vpack.c.bf16 %v1485_v9, %v1427_v59 }
 0x29a   : > { %v1511_v11 = vsel %vm1503_vm0, %v1501_v10, 0  ;;  %2936 = vmatprep.subr.msk.bf16.mxu1 %vm1503_vm0, %v1501_v10 }
 0x29b   : > { %2873 = vmatpush3.bf16.xpose.msra.mxu1 %v1511_v11  ;;  %v1489_v12 = vpop.permute.xlu1 %1488 }
 0x29c   : > { %v1502_v13 = vpack.c.bf16 %v1489_v12, %v1429_v60 }
 0x29e   : > { %2937 = vmatprep.subr.msk.bf16.mxu1 %vm1503_vm0, %v1502_v13  ;;  %v1514_v14 = vsel %vm1503_vm0, %v1502_v13, 0 }
 0x2a3   : > { %2875 = vmatpush3.bf16.xpose.msra.mxu1 %v1514_v14 }
 0x31c   : > { %v4089_v19 = vpop.f32.mrb[0].mxu0 }
 0x31d   : > { %v4092_v21 = vpop.f32.mrb[1].mxu0 }
 0x31e   : > { %v3030_v22 = vpack.i.bf16 %v4092_v21, %v4089_v19  ;;  %v1004_v23 = vpop.f32.mrb[2].mxu0 }
 0x31f   : > { %v1005_v24 = vpop.f32.mrb[3].mxu0 }
 0x320   : > { %3031 = vrot.lane.b32.xlu0 %v3030_v22, %s3538_s4 }
 0x35c   : > { %v1468_v6 = vpop.f32.mrb[4].mxu0 }
 0x35d   : > { %v1470_v7 = vpop.f32.mrb[5].mxu0 }
 0x35e   : > { %v1472_v8 = vpop.f32.mrb[6].mxu0 }
 0x35f   : > { %v1473_v9 = vpop.f32.mrb[7].mxu0 }
 0x392   : > { %v3032_v54 = vpop.permute.xlu0 %3031 }
 0x393   : > { %v3034_v55 = vunpack.i.h.bf16 %v3032_v54  ;;  %v3033_v56 = vunpack.i.l.bf16 %v3032_v54 }
 0x395   : > { %v1500_v57 = vpack.c.bf16 %v3034_v55, %v4092_v21  ;;  %v1499_v58 = vpack.c.bf16 %v3033_v56, %v4089_v19  ;;  %v3158_v55 = vld [vmem:[%s3961_s24 + $0x28] sm:$0xff]   ;;  %v3160_v56 = vld [vmem:[%s3961_s24 + $0x30] sm:$0xff]  }
 0x397   : > { %2876 = vmatprep.mubr.msk.bf16.mxu1 %vm1503_vm0, %v1499_v58  ;;  %v3162_v58 = vld [vmem:[%s3961_s24 + $0x38] sm:$0xff]  }
 0x398   : > { %2877 = vmatmul.mubr.msk.bf16.vlgmr.msra.gmra.mrb[4].mxu1 %vm1503_vm0, %v1500_v57  ;;  %v3161_v57 = vld [vmem:[%s3961_s24 + $0x18] sm:$0xff]  }
 0x399   : > { %2907 = vmatpush3.bf16.msra.mxu0 %v3161_v57 }
 0x39a   : > { %2924 = vmatprep.subr.bf16.mxu0 %v3539_v31 }
 0x46b   : > { %v2878_v59 = vpop.f32.mrb[4].mxu1 }
 0x46c   : > { %v1550_v60 = vpop.f32.mrb[5].mxu1  ;;  %v1567_v0 = vmul.f32 0.125, %v2878_v59 }
 0x46d   : > { %v1565_v61 = vmul.f32 0.125, %v1550_v60  ;;  %v2879_v62 = vpop.f32.mrb[6].mxu1 }
 0x46e   : > { %v1553_v63 = vpop.f32.mrb[7].mxu1  ;;  %v1568_v3 = vmul.f32 0.125, %v2879_v62  ;;  %v1576_v4 = vsel %vm1569_vm1, %v1567_v0, -inf }
 0x46f   : > { %v1566_v1 = vmul.f32 0.125, %v1553_v63  ;;  %v1570_v42 = vsel %vm1569_vm1, %v1565_v61, -inf }
 0x470   : > { %1571 = vmax.xlane.f32.xlu1 %v1570_v42  ;;  %v1579_v5 = vsel %vm1569_vm1, %v1568_v3, -inf }
 0x471   : > { %v1573_v2 = vsel %vm1569_vm1, %v1566_v1, -inf }
 0x472   : > { %1574 = vmax.xlane.f32.xlu0 %v1573_v2  ;;  %v3165_v2 = vld [vmem:[%s3961_s24 + $0x68] sm:$0xff]  }
 0x474   : > { %1577 = vmax.xlane.f32.xlu1 %v1576_v4  ;;  %v3167_v4 = vld [vmem:[%s3961_s24 + $0x70] sm:$0xff]  }
 0x478   : > { %1580 = vmax.xlane.f32.xlu1 %v1579_v5  ;;  %v3168_v5 = vld [vmem:[%s3961_s24 + $0x50] sm:$0xff]  }
 0x4fd   : > { %v1572_v10 = vpop.xlane.xlu1 %1571 }
 0x4fe   : > { %v1582_v11 = vsub.f32 %v1565_v61, %v1572_v10  ;;  %v3163_v61 = vld [vmem:[%s3961_s24 + $0x60] sm:$0xff]  }
 0x4ff   : > { %v1575_v12 = vpop.xlane.xlu0 %1574 }
 0x500   : > { %v1586_v15 = vmul.f32 1.442695, %v1582_v11  ;;  %v1583_v16 = vsub.f32 %v1566_v1, %v1575_v12  ;;  %v3164_v1 = vld [vmem:[%s3961_s24 + $0x40] sm:$0xff]  }
 0x501   : > { %v1578_v13 = vpop.xlane.xlu1 %1577 }
 0x502   : > { %v1584_v14 = vsub.f32 %v1567_v0, %v1578_v13  ;;  %v1588_v20 = vmul.f32 1.442695, %v1583_v16 }
 0x504   : > { %v1590_v17 = vmul.f32 1.442695, %v1584_v14 }
 0x505   : > { %v1581_v18 = vpop.xlane.xlu1 %1580 }
 0x506   : > { %3213 = vpow2.f32 %v1590_v17  ;;  %v1585_v19 = vsub.f32 %v1568_v3, %v1581_v18  ;;  %v3166_v3 = vld [vmem:[%s3961_s24 + $0x48] sm:$0xff]  }
 0x507   : > { %3215 = vpow2.f32 %v1586_v15 }
 0x508   : > { %v1592_v21 = vmul.f32 1.442695, %v1585_v19 }
 0x50a   : > { %3217 = vpow2.f32 %v1592_v21 }
 0x50b   : > { %3219 = vpow2.f32 %v1588_v20 }
 0x510   : > { %v3214_v22 = vpop.eup %3213 }
 0x511   : > { %v1600_v23 = vsel %vm1569_vm1, %v3214_v22, 0.0  ;;  %v3216_v24 = vpop.eup %3215 }
 0x512   : > { %1601 = vadd.xlane.f32.xlu1 %v1600_v23  ;;  %v1594_v26 = vsel %vm1569_vm1, %v3216_v24, 0.0 }
 0x514   : > { %v3218_v25 = vpop.eup %3217 }
 0x515   : > { %v1603_v27 = vsel %vm1569_vm1, %v3218_v25, 0.0  ;;  %v3220_v28 = vpop.eup %3219 }
 0x516   : > { %1595 = vadd.xlane.f32.xlu1 %v1594_v26  ;;  %1604 = vadd.xlane.f32.xlu0 %v1603_v27  ;;  %v1597_v29 = vsel %vm1569_vm1, %v3220_v28, 0.0 }
 0x51a   : > { %1598 = vadd.xlane.f32.xlu1 %v1597_v29 }
 0x52b   : > { %1492 = vrot.lane.b32.xlu1 %v1468_v6, %s3538_s4 }
 0x52c   : > { %1496 = vrot.lane.b32.xlu0 %v1470_v7, %s3538_s4 }
 0x59f   : > { %v1602_v34 = vpop.xlane.xlu1 %1601 }
 0x5a3   : > { %v1596_v35 = vpop.xlane.xlu1 %1595  ;;  %v1605_v36 = vpop.xlane.xlu0 %1604 }
 0x5a4   : > { %3221 = vrcp.f32 %v1605_v36  ;;  %v3179_v36 = vld [vmem:[%s3963_s1 + $0x24] ss:$8 sps:$4 sm:$0xff]  }
 0x5a5   : > { %3223 = vrcp.f32 %v1596_v35  ;;  %v3174_v35 = vld [vmem:[%s3963_s1 + $0x10] ss:$8 sps:$4 sm:$0xff]  }
 0x5a6   : > { %3225 = vrcp.f32 %v1602_v34  ;;  %v3176_v34 = vld [vmem:[%s3963_s1 + $0x14] ss:$8 sps:$4 sm:$0xff]  }
 0x5a7   : > { %v1599_v37 = vpop.xlane.xlu1 %1598  ;;  %v1497_v38 = vpop.permute.xlu0 %1496 }
 0x5a8   : > { %3227 = vrcp.f32 %v1599_v37  ;;  %v1617_v41 = vpack.c.bf16 %v1497_v38, %v1470_v7  ;;  %v3170_v7 = vld [vmem:[%s3961_s24 + $0x58] sm:$0xff]   ;;  %v3177_v37 = vld [vmem:[%s3963_s1 + $0x20] ss:$8 sps:$4 sm:$0xff]  }
 0x5ab   : > { %v1493_v39 = vpop.permute.xlu1 %1492 }
 0x5ac   : > { %v1616_v40 = vpack.c.bf16 %v1493_v39, %v1468_v6  ;;  %v3169_v6 = vld [vmem:[%s3961_s24 + $0x78] sm:$0xff]  }
 0x5ae   : > { %2880 = vmatprep.subr.bf16.mxu1 %v1616_v40  ;;  %v3222_v43 = vpop.eup %3221 }
 0x5af   : > { %2881 = vmatpush3.bf16.msra.mxu1 %v1616_v40  ;;  %v3224_v44 = vpop.eup %3223  ;;  %v1613_v47 = vmul.f32 %v3222_v43, %v3218_v25  ;;  %v2773_v25 = vld [vmem:[%s817_s27] ss:$0 sm:$0xff]  ;;  %v3182_v43 = vld [vmem:[%s3963_s1 + $0x34] ss:$8 sps:$4 sm:$0xff]  }
 0x5b0   : > { %2882 = vmatprep.subr.bf16.mxu1 %v1617_v41  ;;  %v3226_v45 = vpop.eup %3225  ;;  %v1610_v48 = vmul.f32 %v3224_v44, %v3216_v24  ;;  %v3180_v44 = vld [vmem:[%s3963_s1 + $0x30] ss:$8 sps:$4 sm:$0xff]  }
 0x5b1   : > { %v1612_v50 = vmul.f32 %v3226_v45, %v3214_v22  ;;  %v3185_v45 = vld [vmem:[%s3963_s1 + $0x44] ss:$8 sps:$4 sm:$0xff]  }
 0x5b2   : > { %v3228_v46 = vpop.eup %3227 }
 0x5b3   : > { %2883 = vmatpush3.bf16.msra.mxu1 %v1617_v41  ;;  %v1611_v49 = vmul.f32 %v3228_v46, %v3220_v28  ;;  %v1615_v54 = vpack.c.bf16 %v1613_v47, %v1612_v50  ;;  %v3183_v46 = vld [vmem:[%s3963_s1 + $0x40] ss:$8 sps:$4 sm:$0xff]   ;;  %v3188_v47 = vld [vmem:[%s3963_s1 + $0x54] ss:$8 sps:$4 sm:$0xff]  }
 0x5b4   : > { %2888 = vmatprep.subr.bf16.mxu1 %v3539_v31  ;;  %v3189_v50 = vld [vmem:[%s3963_s1 + $0x60] ss:$8 sps:$4 sm:$0xff]  }
 0x5b5   : > { %v1614_v51 = vpack.c.bf16 %v1611_v49, %v1610_v48  ;;  %v3186_v48 = vld [vmem:[%s3963_s1 + $0x50] ss:$8 sps:$4 sm:$0xff]   ;;  %v3191_v49 = vld [vmem:[%s3963_s1 + $0x64] ss:$8 sps:$4 sm:$0xff]  }
 0x5b7   : > { %2884 = vmatprep.mubr.msk.bf16.mxu1 %vm1569_vm1, %v1614_v51  ;;  %v3194_v51 = vld [vmem:[%s3963_s1 + $0x74] ss:$8 sps:$4 sm:$0xff]  }
 0x5b8   : > { %2885 = vmatmul.mubr.msk.bf16.vlgmr.msra.gmra.mrb[8].mxu1 %vm1569_vm1, %v1615_v54 }
 0x5b9   : > { %2889 = vmatpush3.bf16.msra.mxu1 %v3156_v52  ;;  %2896 = vmatprep.mubr.msk.bf16.mxu1 %vm3540_vm2, %v3539_v31  ;;  %v3192_v52 = vld [vmem:[%s3963_s1 + $0x70] ss:$8 sps:$4 sm:$0xff]  }
 0x5ba   : > { %2890 = vmatprep.subr.bf16.mxu1 %v3539_v31 }
 0x5bd   : > { %2891 = vmatpush3.bf16.msra.mxu1 %v3158_v55 }
 0x5be   : > { %2892 = vmatprep.subr.bf16.mxu1 %v3539_v31 }
 0x5c1   : > { %2893 = vmatpush3.bf16.msra.mxu1 %v3160_v56 }
 0x5c2   : > { %2894 = vmatprep.subr.bf16.mxu1 %v3539_v31 }
 0x5c5   : > { %2895 = vmatpush3.bf16.msra.mxu1 %v3162_v58  ;;  %v2774_v58 = vld [vmem:[%s820_s5] ss:$0 sm:$0xff] }
 0x5c6   : > { %2912 = vmatprep.subr.bf16.mxu1 %v3539_v31 }
 0x68b   : > { %v2886_v59 = vpop.f32.mrb[8].mxu1 }
 0x68c   : > { %v1658_v60 = vpop.f32.mrb[9].mxu1  ;;  %v1841_v9 = vpack.c.bf16 %v2886_v59, %v2886_v59 }
 0x68d   : > { %v1705_v62 = vpack.c.bf16 %v1658_v60, %v1658_v60  ;;  %v2887_v63 = vpop.f32.mrb[10].mxu1  ;;  %v2775_v60 = vld [vmem:[%s823_s20] ss:$0 sm:$0xff] }
 0x68e   : > { %v1661_v0 = vpop.f32.mrb[11].mxu1  ;;  %v1910_v8 = vpack.c.bf16 %v2887_v63, %v2887_v63 }
 0x68f   : > { %v1706_v42 = vpack.c.bf16 %v1661_v0, %v1661_v0  ;;  %2909 = vmatmul.mubr.msk.bf16.vlgmr.msra.gmra.mrb[8].mxu0 %vm1503_vm0, %v1705_v62  ;;  %v3195_v0 = vld [vmem:[%s4003_s19 + $0x40] sm:$0xff]  }
 0x690   : > { %2925 = vmatpush3.bf16.msra.mxu0 %v3163_v61  ;;  %2932 = vmatprep.mubr.msk.bf16.mxu0 %vm3540_vm2, %v3539_v31 }
 0x691   : > { %2897 = vmatmul.mubr.msk.bf16.vlgmr.msra.gmra.mrb[12].mxu1 %vm1503_vm0, %v1706_v42  ;;  %2926 = vmatprep.subr.bf16.mxu0 %v3539_v31  ;;  %v3197_v42 = vld [vmem:[%s4003_s19 + $0x48] sm:$0xff]  }
 0x692   : > { %2913 = vmatpush3.bf16.msra.mxu1 %v3164_v1  ;;  %2920 = vmatprep.mubr.msk.bf16.mxu1 %vm3540_vm2, %v3539_v31  ;;  %v3196_v1 = vld [vmem:[%s4003_s19] sm:$0xff]  }
 0x693   : > { %2914 = vmatprep.subr.bf16.mxu1 %v3539_v31 }
 0x694   : > { %2927 = vmatpush3.bf16.msra.mxu0 %v3165_v2  ;;  %v3198_v2 = vld [vmem:[%s4003_s19 + $0x8] sm:$0xff]  }
 0x695   : > { %2928 = vmatprep.subr.bf16.mxu0 %v3539_v31 }
 0x696   : > { %2915 = vmatpush3.bf16.msra.mxu1 %v3166_v3  ;;  %v3199_v3 = vld [vmem:[%s4003_s19 + $0x50] sm:$0xff]  }
 0x697   : > { %2916 = vmatprep.subr.bf16.mxu1 %v3539_v31 }
 0x698   : > { %2929 = vmatpush3.bf16.msra.mxu0 %v3167_v4  ;;  %v3200_v4 = vld [vmem:[%s4003_s19 + $0x10] sm:$0xff]  }
 0x699   : > { %2930 = vmatprep.subr.bf16.mxu0 %v3539_v31 }
 0x69a   : > { %2917 = vmatpush3.bf16.msra.mxu1 %v3168_v5  ;;  %v3201_v5 = vld [vmem:[%s4003_s19 + $0x58] sm:$0xff]  }
 0x69b   : > { %2918 = vmatprep.subr.bf16.mxu1 %v3539_v31 }
 0x69c   : > { %2931 = vmatpush3.bf16.msra.mxu0 %v3169_v6  ;;  %v3202_v6 = vld [vmem:[%s4003_s19 + $0x18] sm:$0xff]  }
 0x69d   : > { %2850 = vmatprep.subr.bf16.mxu0 %v3195_v0 }
 0x69e   : > { %2919 = vmatpush3.bf16.msra.mxu1 %v3170_v7  ;;  %v3203_v7 = vld [vmem:[%s4003_s19 + $0x60] sm:$0xff]  }
 0x69f   : > { %2933 = vmatmul.mubr.msk.bf16.vlgmr.msra.gmra.mrb[12].mxu0 %vm1503_vm0, %v1910_v8  ;;  %2124 = vmatprep.subr.bf16.mxu1 %v3173_v33  ;;  %v3204_v8 = vld [vmem:[%s4003_s19 + $0x20] sm:$0xff]  }
 0x6a0   : > { %2851 = vmatpush3.bf16.msra.mxu0 %v3196_v1 }
 0x6a1   : > { %2921 = vmatmul.mubr.msk.bf16.vlgmr.msra.gmra.mrb[16].mxu1 %vm1503_vm0, %v1841_v9  ;;  %2852 = vmatprep.subr.bf16.mxu0 %v3197_v42  ;;  %v3205_v9 = vld [vmem:[%s4003_s19 + $0x68] sm:$0xff]   ;;  %v2810_v42 = vld [vmem:[%s4377_s8] ss:$0 sm:$0xff] (!%p2809_p10) }
 0x6a2   : > { %2156 = vmatprep.mubr.bf16.mxu1 %v3537_v53  ;;  %2125 = vmatpush1.bf16.msra.mxu1 %v3171_v32 }
 0x6a3   : > { %2126 = vmatprep.subr.bf16.mxu1 %v3176_v34 }
 0x6a4   : > { %2853 = vmatpush3.bf16.msra.mxu0 %v3198_v2  ;;  %v2811_v2 = vld [vmem:[%s4378_s9] ss:$0 sm:$0xff] (!%p2809_p10) }
 0x6a5   : > { %2854 = vmatprep.subr.bf16.mxu0 %v3199_v3 }
 0x6a6   : > { %2127 = vmatpush1.bf16.msra.mxu1 %v3174_v35 }
 0x6a7   : > { %2128 = vmatprep.subr.bf16.mxu1 %v3179_v36 }
 0x6a8   : > { %2855 = vmatpush3.bf16.msra.mxu0 %v3200_v4 }
 0x6a9   : > { %2856 = vmatprep.subr.bf16.mxu0 %v3201_v5 }
 0x6aa   : > { %2129 = vmatpush1.bf16.msra.mxu1 %v3177_v37 }
 0x6ab   : > { %2130 = vmatprep.subr.bf16.mxu1 %v3182_v43 }
 0x6ac   : > { %2857 = vmatpush3.bf16.msra.mxu0 %v3202_v6 }
 0x6ad   : > { %2858 = vmatprep.subr.bf16.mxu0 %v3203_v7 }
 0x6ae   : > { %2131 = vmatpush1.bf16.msra.mxu1 %v3180_v44 }
 0x6af   : > { %2132 = vmatprep.subr.bf16.mxu1 %v3185_v45 }
 0x6b0   : > { %2859 = vmatpush3.bf16.msra.mxu0 %v3204_v8 }
 0x6b1   : > { %2860 = vmatprep.subr.bf16.mxu0 %v3205_v9 }
 0x6b2   : > { %2133 = vmatpush1.bf16.msra.mxu1 %v3183_v46 }
 0x6b3   : > { %2134 = vmatprep.subr.bf16.mxu1 %v3188_v47 }
 0x6b6   : > { %2135 = vmatpush1.bf16.msra.mxu1 %v3186_v48 }
 0x6b7   : > { %2136 = vmatprep.subr.bf16.mxu1 %v3191_v49 }
 0x6ba   : > { %2137 = vmatpush1.bf16.msra.mxu1 %v3189_v50  ;;  %v2792_v50 = vld [vmem:[%s830_s22] ss:$0 sm:$0xff] }
 0x6bb   : > { %2138 = vmatprep.subr.bf16.mxu1 %v3194_v51 }
 0x6be   : > { %2139 = vmatpush1.bf16.msra.mxu1 %v3192_v52 }
 0x762   : > { %v1835_v10 = vpop.f32.mrb[8].mxu0 }
 0x763   : > { %v2910_v11 = vpop.f32.mrb[9].mxu0 }
 0x764   : > { %v1768_v12 = vpop.f32.mrb[12].mxu1  ;;  %v1838_v13 = vpop.f32.mrb[10].mxu0  ;;  %v3207_v11 = vld [vmem:[%s4003_s19 + $0x70] sm:$0xff]  }
 0x765   : > { %v1836_v14 = vadd.f32 %v1835_v10, %v1768_v12  ;;  %v2898_v15 = vpop.f32.mrb[13].mxu1  ;;  %v2911_v16 = vpop.f32.mrb[11].mxu0  ;;  %v3206_v10 = vld [vmem:[%s4003_s19 + $0x28] sm:$0xff]   ;;  %v3208_v12 = vld [vmem:[%s4003_s19 + $0x30] sm:$0xff]   ;;  %v3209_v13 = vld [vmem:[%s4003_s19 + $0x78] sm:$0xff]  }
 0x766   : > { %v1771_v17 = vpop.f32.mrb[14].mxu1  ;;  %2861 = vmatpush3.bf16.msra.mxu0 %v3206_v10  ;;  %v2034_v15 = vlaneseq }
 0x767   : > { %v2899_v18 = vpop.f32.mrb[15].mxu1  ;;  %2862 = vmatprep.subr.bf16.mxu0 %v3207_v11 }
 0x768   : > { %v2035_v16 = vshrl.u32 %v2034_v15, 7  ;;  %v2032_v18 = vld [vmem:[%s3997_s12] sm:$0x3] }
 0x76a   : > { %2863 = vmatpush3.bf16.msra.mxu0 %v3208_v12  ;;  %v2036_v17 = vsub.s32 0, %v2035_v16 }
 0x76b   : > { %2864 = vmatprep.subr.bf16.mxu0 %v3209_v13 }
 0x772   : > { %v1972_v19 = vpop.f32.mrb[12].mxu0 }
 0x773   : > { %v2934_v20 = vpop.f32.mrb[13].mxu0 }
 0x774   : > { %v1903_v21 = vpop.f32.mrb[16].mxu1  ;;  %v1975_v22 = vpop.f32.mrb[14].mxu0  ;;  %v2037_v20 = vrot.slane %v2032_v18, %v2036_v17 }
 0x775   : > { %v1909_v23 = vadd.f32 %v1903_v21, %v1836_v14  ;;  %v2922_v53 = vpop.f32.mrb[17].mxu1  ;;  %v2935_v24 = vpop.f32.mrb[15].mxu0  ;;  %v3210_v14 = vld [vmem:[%s4003_s19 + $0x38] sm:$0xff]  }
 0x776   : > { %v1906_v26 = vpop.f32.mrb[18].mxu1  ;;  %2865 = vmatpush3.bf16.msra.mxu0 %v3210_v14 }
 0x777   : > { %v1978_v27 = vadd.f32 %v1972_v19, %v1909_v23  ;;  %v2923_v28 = vpop.f32.mrb[19].mxu1  ;;  %v2040_v19 = vsub.s32 1, %v2035_v16 }
 0x779   : > { %v1986_v29 = vadd.f32 %v2773_v25, %v1978_v27  ;;  %v2041_v21 = vrot.slane %v2032_v18, %v2040_v19 }
 0x77b   : > { %v4191_v31 = vadd.f32 %v3235_v30, %v1986_v29 }
 0x77d   : > { %1990 = vadd.xlane.f32.xlu1 %v4191_v31 }
 0x80a   : > { %v1991_v38 = vpop.xlane.xlu1 %1990 }
 0x80b   : > { %v1992_v39 = vmul.f32 0.0078125, %v1991_v38 }
 0x80d   : > { %v1993_v40 = vsub.f32 %v4191_v31, %v1992_v39 }
 0x80f   : > { %v1994_v41 = vmul.f32 %v1993_v40, %v1993_v40 }
 0x811   : > { %1995 = vadd.xlane.f32.xlu0 %v1994_v41 }
 0x89e   : > { %v1996_v54 = vpop.xlane.xlu0 %1995 }
 0x89f   : > { %v1997_v55 = vmul.f32 0.0078125, %v1996_v54 }
 0x8a1   : > { %v1998_v56 = vadd.f32 1e-05, %v1997_v55 }
 0x8a3   : > { %3229 = vrsqrt.f32 %v1998_v56 }
 0x8ad   : > { %v3230_v57 = vpop.eup %3229 }
 0x8ae   : > { %v2000_v59 = vmul.f32 %v3230_v57, %v1993_v40 }
 0x8b0   : > { %v2007_v61 = vmul.f32 %v2774_v58, %v2000_v59 }
 0x8b2   : > { %v2014_v62 = vadd.f32 %v2775_v60, %v2007_v61 }
 0x8b4   : > { %v2015_v63 = vpack.c.bf16 %v2014_v62, %v2014_v62 }
 0x8b6   : > { %2157 = vmatmul.mubr.bf16.vlgmr.msra.gmra.mrb[20].mxu1 %v2015_v63 }
 0x989   : > { %v2158_v22 = vpop.f32.mrb[20].mxu1 }
 0x98a   : > { %v2159_v23 = vadd.f32 %v2158_v22, %v2037_v20  ;;  %v2160_v53 = vpop.f32.mrb[21].mxu1 }
 0x98b   : > { %v2161_v24 = vadd.f32 %v2160_v53, %v2041_v21  ;;  %v2162_v25 = vpop.f32.mrb[22].mxu1 }
 0x98c   : > { %v2167_v26 = vmul.f32 0.044715, %v2159_v23  ;;  %v2163_v27 = vpop.f32.mrb[23].mxu1  ;;  %v2165_v40 = vmul.f32 0.5, %v2159_v23 }
 0x98d   : > { %v2168_v28 = vmul.f32 0.044715, %v2161_v24  ;;  %v2166_v43 = vmul.f32 0.5, %v2161_v24 }
 0x98e   : > { %v2169_v29 = vmul.f32 %v2167_v26, %v2159_v23 }
 0x98f   : > { %v2170_v30 = vmul.f32 %v2168_v28, %v2161_v24 }
 0x990   : > { %v2171_v32 = vmul.f32 %v2169_v29, %v2159_v23 }
 0x991   : > { %v2172_v33 = vmul.f32 %v2170_v30, %v2161_v24 }
 0x992   : > { %v2173_v34 = vadd.f32 %v2171_v32, %v2159_v23 }
 0x993   : > { %v2174_v35 = vadd.f32 %v2172_v33, %v2161_v24 }
 0x994   : > { %v2175_v36 = vmul.f32 0.7978846, %v2173_v34 }
 0x995   : > { %v2176_v37 = vmul.f32 0.7978846, %v2174_v35 }
 0x996   : > { %3231 = vtanh.f32 %v2175_v36 }
 0x997   : > { %3233 = vtanh.f32 %v2176_v37 }
 0x9a0   : > { %v3232_v38 = vpop.eup %3231 }
 0x9a1   : > { %v3234_v39 = vpop.eup %3233  ;;  %v2179_v41 = vadd.f32 1.0, %v3232_v38 }
 0x9a2   : > { %v2180_v44 = vadd.f32 1.0, %v3234_v39 }
 0x9a3   : > { %v2181_v45 = vmul.f32 %v2179_v41, %v2165_v40 }
 0x9a4   : > { %v2182_v46 = vmul.f32 %v2180_v44, %v2166_v43 }
 0x9a5   : > { %v2183_v48 = vpack.c.bf16 %v2181_v45, %v2181_v45 }
 0x9a6   : > { %v2184_v47 = vpack.c.bf16 %v2182_v46, %v2182_v46 }
 0x9a8   : > { %2352 = vmatprep.mubr.bf16.mxu0 %v2184_v47 }
 0x9a9   : > { %2353 = vmatmul.mubr.bf16.vlgmr.msra.gmra.mrb[16].mxu0 %v2183_v48 }
 0xa7c   : > { %v2866_v49 = vpop.f32.mrb[16].mxu0 }
 0xa7d   : > { %v2867_v51 = vpop.f32.mrb[17].mxu0 }
 0xa7e   : > { %v2868_v52 = vadd.f32 %v2867_v51, %v2866_v49  ;;  %v2869_v54 = vpop.f32.mrb[18].mxu0  ;;  %2365 = sbr.rel (%p2809_p10) target bundleno = 3004 (0xbbc), region = 120 }
 0xa7f   : > { %v2870_v55 = vpop.f32.mrb[19].mxu0 }
 0xa80   : > { %v2355_v56 = vadd.f32 %v2868_v52, %v2792_v50 }
 0xa82   : > { %v2360_v57 = vadd.f32 %v2355_v56, %v4191_v31 }
 0xa84   : > { %2361 = vst [vmem:[#allocation2] sm:$0xff] %v2360_v57  ;;  %2368 = vadd.xlane.f32.xlu0 (!%p2809_p10), %v2360_v57 }
 0xb11   : > { %v2369_v58 = vpop.xlane.xlu0 %2368 }
 0xb12   : > { %v2370_v59 = vmul.f32 0.0078125, %v2369_v58 }
 0xb14   : > { %v2371_v60 = vsub.f32 %v2360_v57, %v2370_v59 }
 0xb16   : > { %v2372_v61 = vmul.f32 %v2371_v60, %v2371_v60 }
 0xb18   : > { %2373 = vadd.xlane.f32.xlu0 %v2372_v61 }
 0xba5   : > { %v2374_v62 = vpop.xlane.xlu0 %2373 }
 0xba6   : > { %v2375_v63 = vmul.f32 0.0078125, %v2374_v62 }
 0xba8   : > { %v2376_v0 = vadd.f32 1e-05, %v2375_v63 }
 0xbaa   : > { %3236 = vrsqrt.f32 %v2376_v0 }
 0xbb4   : > { %v3237_v1 = vpop.eup %3236 }
 0xbb5   : > { %v2378_v31 = vmul.f32 %v3237_v1, %v2371_v60 }
 0xbb7   : > { %v2385_v3 = vmul.f32 %v2810_v42, %v2378_v31 }
 0xbb9   : > { %v2392_v4 = vadd.f32 %v2811_v2, %v2385_v3 }
 0xbbb   : > { %2393 = vst [vmem:[#allocation15] sm:$0xff] %v2392_v4 }
 0xbbc PF: > { %p2984_p5 = scmp.eq.s32.totalorder %s3785_s15, 1  ;;  %s3541_s14 = smov [#allocation15]  }
 0xbbd   : > { %s2401_s23 = sshll.u32 %s3541_s14, 4  ;;  %s2402_s23 = int_to_ptr.vmem [resolvable:$true] %s2401_s23 }
 0xbbe   : > { %s3446_s19 = scalar_lea.vmem %s2402_s23, 128  ;;  %p3453_p6 = scmp.lt.s32.totalorder %s2402_s23, %s2402_s23 }
 0xbbf   : > { %p3447_p8 = scmp.ne.s32.totalorder %s2402_s23, %s3446_s19  ;;  %p3454_p11 = scmp.lt.s32.totalorder %s3446_s19, %s3446_s19 }
 0xbc1   : > { %p3448_p0 = pnand %p3447_p8, %p2984_p5  ;;  %p3455_p1 = por %p3454_p11, %p3453_p6 }
 0xbc3   : > { %p3449_p13 = pneg %p3448_p0 }
 0xbc5   : > { %p3456_p7 = pnand %p3455_p1, %p3449_p13 }
 0xbc7   : > { %3459 = shalt.err (!%p3456_p7)
}
 0xbc8   : > { %s4379_s29 = sld [smem:[#allocation39_spill]] }
 0xbce   : > { %s3460_s30 = scalar_lea.hbm %s4379_s29, 128 }
 0xbcf   : > { %p3461_p9 = scmp.ne.s32.totalorder %s4379_s29, %s3460_s30  ;;  %p3466_p12 = scmp.lt.u32.totalorder %s3460_s30, %s4379_s29 }
 0xbd1   : > { %p3462_p2 = pnand %p3461_p9, %p2984_p5 }
 0xbd3   : > { %p3463_p4 = pneg %p3462_p2 }
 0xbd5   : > { %p3468_p3 = pnand %p3466_p12, %p3463_p4 }
 0xbd7   : > { %3471 = shalt.err (!%p3468_p3)
}
 0xbd8   : > { %2955 = dma.vmem_to_hbm [thread:$0]  (%p2984_p5), %s2402_s23, 128, %s4379_s29, [#allocation5]  }
 0xbd9   : > { %3505 = dma.done.wait (%p2984_p5), [#allocation5], 128  }
 0xbda   : > { %3507 = vsyncadd (%p2984_p5), [#allocation5], 4294967168 }
 0xbdb PF: > { %s4380_s24 = sld [smem:[#allocation23_spill]]  ;;  %s4381_s21 = sld [smem:[#allocation21_spill]] }
 0xbdc   : > { %s4382_s22 = sld [smem:[#allocation22_spill]]  ;;  %s4383_s23 = sld [smem:[#allocation24_spill]] }
 0xbe1   : > { %p34_p10 = scmp.ge.s32.totalorder %s4380_s24, 4  }
 0xbe3   :  { %36 = sbr.rel (!%p34_p10) target bundleno = 25 (0x19), region = 214 }
 0xbea   :  { %2414 = vsyncpa [#allocation4], 1 }
 0xbeb   :  { %2416 = vsyncpa [#allocation4 + $0x1], 1 }
 0xbec   :  { %2417 = vsyncpa [#allocation7], 1 }
 0xbed   :  { %2419 = vsyncpa [#allocation7 + $0x1], 1 }
 0xbee   :  { %2420 = vsyncpa [#allocation10], 1 }
 0xbef   :  { %2422 = vsyncpa [#allocation10 + $0x1], 1 }
 0xbf0   :  { %2423 = vsyncpa [#allocation13], 1 }
 0xbf1   :  { %2425 = vsyncpa [#allocation13 + $0x1], 1 }
 0xbf2   :  { %2426 = vsyncpa [#allocation5], 1 }
 0xbf3   :  { %2428 = vsyncpa [#allocation5 + $0x1], 1 }

</bundles_post_ra>
